<compile_context>
chip_gen: v7x
topology: tpu7x:2x2x1
jax: 0.10.0
libtpu: 0.0.40
codegen_flags: <defaults>
</compile_context>

<pallas_src>
import jax
import jax.numpy as jnp
from jax.experimental import pallas as pl
from jax.experimental.pallas import tpu as pltpu

EPS = 1e-5  # PyTorch BatchNorm default eps


# ---------------------------------------------------------------------------
# Fused kernel + wrapper
#   h1 = relu(bn1(conv1(x)))        (BG*TN, 64)
#   h2 = relu(bn2(conv2(h1)))       (BG*TN, 128)
#   h3 = bn3(conv3(h2))             (BG*TN, H)
#   g  = running max over point tiles, per batch element       (BG, H)
#   y  = relu(bn(linear(g)))  on the last point tile            (BG, BOT)
# BN is pre-folded into (w, b) pairs, so each layer is x @ W + b.
# Grid = (batch groups [parallel], point tiles [arbitrary / reduction, innermost]).
# ---------------------------------------------------------------------------
def sparenet_encode(x_bnc, folded_params, *, tile_n=2048, batch_groups=1,
                    compute_dtype=jnp.bfloat16,
                    vmem_limit_bytes=48 * 1024 * 1024):
    """x_bnc: (B, N, 3) float32.  folded_params: [w1,b1,w2,b2,w3,b3,wl,bl]."""
    B, N, C = x_bnc.shape
    w1, b1, w2, b2, w3, b3, wl, bl = folded_params
    H = w3.shape[1]
    BOT = wl.shape[1]

    # ---- batch groups (v7x dual TensorCore); fall back to 1 unless sublane-safe ----
    G = batch_groups
    if G < 1 or B % G != 0 or (G > 1 and (B // G) % 8 != 0):
        G = 1
    BG = B // G

    # ---- point tiling: biggest 16-aligned tile whose f32 intermediates (h1+h2+h3)
    #      stay under ~12 MiB per step (fits v7x's tighter 64 MiB physical VMEM with
    #      double-buffered inputs + weights; ample headroom on v5e/v6e). ----
    bytes_per_row = (64 + 128 + H) * 4
    row_cap = max(16, (12 << 20) // (bytes_per_row * BG))
    TN = min(tile_n, max(N, 16), row_cap)
    TN = max(16, (TN // 16) * 16)            # 16-row alignment (bf16 sublane tile)
    NT = pl.cdiv(N, TN)
    N_pad = NT * TN

    # Pad points by edge-replication (duplicated points never change the max), then
    # zero-pad channels 3 -> 8 (sublane-aligned MXU contraction, clean DMA layout).
    # No tile-major transpose: the kernel reads (BG, TN, 8) blocks straight from this.
    x = x_bnc
    if N_pad != N:
        x = jnp.pad(x, ((0, 0), (0, N_pad - N), (0, 0)), mode="edge")
    if C < 8:
        x = jnp.pad(x, ((0, 0), (0, 0), (0, 8 - C)))
    x = x.astype(compute_dtype)

    # Layer-1 weight zero-padded to 8 contraction rows; padded rows contribute nothing.
    w1p = jnp.pad(w1, ((0, 8 - w1.shape[0]), (0, 0))) if w1.shape[0] < 8 else w1
    # Matmul weights in compute dtype (bf16: full-rate MXU + half the weight DMA/VMEM);
    # biases stay f32 and are added to the f32 accumulations.
    params = [w1p.astype(compute_dtype), b1.astype(jnp.float32),
              w2.astype(compute_dtype), b2.astype(jnp.float32),
              w3.astype(compute_dtype), b3.astype(jnp.float32),
              wl.astype(compute_dtype), bl.astype(jnp.float32)]

    def kernel(x_ref, w1_r, b1_r, w2_r, b2_r, w3_r, b3_r, wl_r, bl_r,
               out_ref, g_acc):
        t = pl.program_id(1)                                     # point-tile (reduction)

        # (BG, TN, 8) -> (BG*TN, 8): layout-free merge (TN multiple of 16, lanes intact).
        x_t = x_ref[...].reshape(BG * TN, 8)

        # Layer 1: K padded to 8 (zero rows), f32 accumulation.
        h1 = jnp.dot(x_t, w1_r[...],
                     preferred_element_type=jnp.float32) + b1_r[...]
        h1 = jnp.maximum(h1, 0.0)

        # Layers 2/3: full-M MXU matmuls, bf16 operands (default) / f32 accumulation.
        h2 = jnp.dot(h1.astype(w2_r.dtype), w2_r[...],
                     preferred_element_type=jnp.float32) + b2_r[...]
        h2 = jnp.maximum(h2, 0.0)
        h3 = jnp.dot(h2.astype(w3_r.dtype), w3_r[...],
                     preferred_element_type=jnp.float32) + b3_r[...]   # (BG*TN, H)

        # Vectorized per-batch, per-tile max (single reduce + full-slab VPU max).
        tile_max = jnp.max(h3.reshape(BG, TN, H), axis=1)              # (BG, H)

        @pl.when(t == 0)
        def _():
            g_acc[...] = tile_max

        @pl.when(t > 0)
        def _():
            g_acc[...] = jnp.maximum(g_acc[...], tile_max)

        # Head (Linear + folded BN + ReLU): batched to M = BG, computed once per group.
        @pl.when(t == NT - 1)
        def _():
            g = g_acc[...].astype(wl_r.dtype)                          # (BG, H)
            y = jnp.dot(g, wl_r[...],
                        preferred_element_type=jnp.float32) + bl_r[...]
            out_ref[...] = jnp.maximum(y, 0.0).astype(out_ref.dtype)

    def const_spec(p):
        nd = p.ndim
        return pl.BlockSpec(p.shape, lambda g, t, nd=nd: (0,) * nd)

    out = pl.pallas_call(
        kernel,
        out_shape=jax.ShapeDtypeStruct((B, BOT), jnp.float32),
        grid=(G, NT),
        in_specs=[pl.BlockSpec((BG, TN, 8), lambda g, t: (g, t, 0))]
        + [const_spec(p) for p in params],
        out_specs=pl.BlockSpec((BG, BOT), lambda g, t: (g, 0)),
        scratch_shapes=[pltpu.VMEM((BG, H), jnp.float32)],
        compiler_params=pltpu.CompilerParams(
            # batch groups independent; point-tile axis is a reduction (innermost).
            dimension_semantics=("parallel", "arbitrary"),
            vmem_limit_bytes=vmem_limit_bytes),
    )(x, *params)
    return out


# ---------------------------------------------------------------------------
# Parameter setup (deterministic, synthetic) + BN folding (glue, plain JAX)
# ---------------------------------------------------------------------------
def fold_bn(w_oc_ic, bias_oc, gamma, beta, mean, var):
    """y = BN(x @ w.T + bias)  ->  x @ w_eff + b_eff ; returns (Cin,Cout),(1,Cout)."""
    scale = gamma / jnp.sqrt(var + EPS)
    w_eff = (w_oc_ic * scale[:, None]).T
    b_eff = (bias_oc - mean) * scale + beta
    return w_eff.astype(jnp.float32), b_eff[None, :].astype(jnp.float32)


def make_params(key, hide_size, bottleneck_size):
    dims = [(64, 3), (128, 64), (hide_size, 128), (bottleneck_size, hide_size)]
    raw = []
    for (cout, cin) in dims:
        key, kw, kb, kg, kbe, km, kv = jax.random.split(key, 7)
        raw.append(dict(
            w=0.1 * jax.random.normal(kw, (cout, cin), jnp.float32),
            b=0.1 * jax.random.normal(kb, (cout,), jnp.float32),
            gamma=1.0 + 0.1 * jax.random.normal(kg, (cout,), jnp.float32),
            beta=0.1 * jax.random.normal(kbe, (cout,), jnp.float32),
            mean=0.1 * jax.random.normal(km, (cout,), jnp.float32),
            var=jax.random.uniform(kv, (cout,), jnp.float32, 0.5, 1.5),
        ))
    folded = []
    for layer in raw:
        w_eff, b_eff = fold_bn(layer["w"], layer["b"], layer["gamma"],
                               layer["beta"], layer["mean"], layer["var"])
        folded += [w_eff, b_eff]
    return raw, folded


# ---------------------------------------------------------------------------
# Pure-JAX reference reproducing the PyTorch forward (inference-mode BN)
# ---------------------------------------------------------------------------
def reference(x_b3n, raw):
    def conv_bn(v, p):  # v: (B, C, N) -> (B, Cout, N)
        v = jnp.einsum("bcn,oc->bon", v, p["w"]) + p["b"][None, :, None]
        return ((v - p["mean"][None, :, None])
                / jnp.sqrt(p["var"][None, :, None] + EPS)
                * p["gamma"][None, :, None] + p["beta"][None, :, None])

    x = jax.nn.relu(conv_bn(x_b3n, raw[0]))
    x = jax.nn.relu(conv_bn(x, raw[1]))
    x = conv_bn(x, raw[2])
    x = jnp.max(x, axis=2)                                   # (B, H)
    p = raw[3]
    x = x @ p["w"].T + p["b"]
    x = (x - p["mean"]) / jnp.sqrt(p["var"] + EPS) * p["gamma"] + p["beta"]
    return jax.nn.relu(x)                                    # (B, BOT)


if __name__ == "__main__":
    HIDE, BOTTLENECK = 256, 128

    key = jax.random.PRNGKey(0)
    key, kx = jax.random.split(key)

    # Small config (PyTorch layout: b x 3 x npoints), single point tile.
    B, N = 2, 128
    x_b3n = jax.random.normal(kx, (B, 3, N), jnp.float32)
    raw, folded = make_params(key, HIDE, BOTTLENECK)
    ref = reference(x_b3n, raw)
    x_bnc = jnp.transpose(x_b3n, (0, 2, 1))                  # -> (B, N, 3) kernel layout

    # f32 path (strict correctness check, all TPU generations).
    out = jax.block_until_ready(
        sparenet_encode(x_bnc, folded, compute_dtype=jnp.float32))
    assert out.shape == (B, BOTTLENECK)
    err = float(jnp.max(jnp.abs(out - ref)))
    assert jnp.allclose(out, ref, rtol=1e-3, atol=1e-3), err

    # bf16 compute path (the production default: full-rate MXU, half the operand DMA);
    # f32 accumulation keeps the error small — checked loosely here.
    out_bf16 = jax.block_until_ready(sparenet_encode(x_bnc, folded))
    assert out_bf16.shape == (B, BOTTLENECK)
    assert bool(jnp.all(jnp.isfinite(out_bf16)))
    assert jnp.allclose(out_bf16, ref, rtol=1e-1, atol=1e-1)

    # Multi-tile reduction + 2 batch groups (v7x dual-TC grid layout), f32 strict check.
    B2, N2 = 16, 200
    key, kx2 = jax.random.split(key)
    x2_b3n = jax.random.normal(kx2, (B2, 3, N2), jnp.float32)
    ref2 = reference(x2_b3n, raw)
    out2 = jax.block_until_ready(
        sparenet_encode(jnp.transpose(x2_b3n, (0, 2, 1)), folded,
                        tile_n=64, batch_groups=2, compute_dtype=jnp.float32))
    assert out2.shape == (B2, BOTTLENECK)
    err2 = float(jnp.max(jnp.abs(out2 - ref2)))
    assert jnp.allclose(out2, ref2, rtol=1e-3, atol=1e-3), err2

    print("KERNEL_OK")
</pallas_src>

<mosaic_0001>
module attributes {stable_mosaic.version = 11 : i64} {
  func.func @kernel(%arg0: i32, %arg1: i32, %arg2: memref<2x128x8xf32, #tpu.memory_space<vmem>>, %arg3: memref<8x64xf32, #tpu.memory_space<vmem>>, %arg4: memref<1x64xf32, #tpu.memory_space<vmem>>, %arg5: memref<64x128xf32, #tpu.memory_space<vmem>>, %arg6: memref<1x128xf32, #tpu.memory_space<vmem>>, %arg7: memref<128x256xf32, #tpu.memory_space<vmem>>, %arg8: memref<1x256xf32, #tpu.memory_space<vmem>>, %arg9: memref<256x128xf32, #tpu.memory_space<vmem>>, %arg10: memref<1x128xf32, #tpu.memory_space<vmem>>, %arg11: memref<2x128xf32, #tpu.memory_space<vmem>>, %arg12: memref<2x256xf32, #tpu.memory_space<vmem>>) attributes {dimension_semantics = [#tpu.dimension_semantics<parallel>, #tpu.dimension_semantics<arbitrary>], iteration_bounds = array<i64: 1, 1>, scalar_prefetch = 0 : i64, scratch_operands = 1 : i64, tpu.core_type = #tpu.core_type<tc>, window_params = [{transform_indices = @transform_0, window_bounds = array<i64: 2, 128, 8>}, {pipeline_mode = #tpu.pipeline_mode<synchronous>, transform_indices = @transform_1, window_bounds = array<i64: 8, 64>}, {pipeline_mode = #tpu.pipeline_mode<synchronous>, transform_indices = @transform_2, window_bounds = array<i64: 1, 64>}, {pipeline_mode = #tpu.pipeline_mode<synchronous>, transform_indices = @transform_3, window_bounds = array<i64: 64, 128>}, {pipeline_mode = #tpu.pipeline_mode<synchronous>, transform_indices = @transform_4, window_bounds = array<i64: 1, 128>}, {pipeline_mode = #tpu.pipeline_mode<synchronous>, transform_indices = @transform_5, window_bounds = array<i64: 128, 256>}, {pipeline_mode = #tpu.pipeline_mode<synchronous>, transform_indices = @transform_6, window_bounds = array<i64: 1, 256>}, {pipeline_mode = #tpu.pipeline_mode<synchronous>, transform_indices = @transform_7, window_bounds = array<i64: 256, 128>}, {pipeline_mode = #tpu.pipeline_mode<synchronous>, transform_indices = @transform_8, window_bounds = array<i64: 1, 128>}, {transform_indices = @transform_9, window_bounds = array<i64: 2, 128>}]} {
    %c0 = arith.constant 0 : index
    %c0_0 = arith.constant 0 : index
    %c0_1 = arith.constant 0 : index
    %0 = vector.load %arg2[%c0, %c0_0, %c0_1] : memref<2x128x8xf32, #tpu.memory_space<vmem>>, vector<2x128x8xf32>
    %1 = vector.shape_cast %0 : vector<2x128x8xf32> to vector<256x8xf32>
    %c0_2 = arith.constant 0 : index
    %c0_3 = arith.constant 0 : index
    %2 = vector.load %arg3[%c0_2, %c0_3] : memref<8x64xf32, #tpu.memory_space<vmem>>, vector<8x64xf32>
    %cst = arith.constant dense<0.000000e+00> : vector<256x64xf32>
    %3 = tpu.matmul %1, %2, %cst {dimension_numbers = #tpu.dot_dimension_numbers<[1], [0], [0], [1], [0, 0, 1, 1], [], []>} : vector<256x8xf32>, vector<8x64xf32>, vector<256x64xf32> -> vector<256x64xf32>
    %c0_4 = arith.constant 0 : index
    %c0_5 = arith.constant 0 : index
    %4 = vector.load %arg4[%c0_4, %c0_5] : memref<1x64xf32, #tpu.memory_space<vmem>>, vector<1x64xf32>
    %5 = vector.broadcast %4 : vector<1x64xf32> to vector<256x64xf32>
    %6 = arith.addf %3, %5 : vector<256x64xf32>
    %cst_6 = arith.constant 0.000000e+00 : f32
    %7 = vector.broadcast %cst_6 : f32 to vector<256x64xf32>
    %8 = arith.maximumf %6, %7 : vector<256x64xf32>
    %c0_7 = arith.constant 0 : index
    %c0_8 = arith.constant 0 : index
    %9 = vector.load %arg5[%c0_7, %c0_8] : memref<64x128xf32, #tpu.memory_space<vmem>>, vector<64x128xf32>
    %cst_9 = arith.constant dense<0.000000e+00> : vector<256x128xf32>
    %10 = tpu.matmul %8, %9, %cst_9 {dimension_numbers = #tpu.dot_dimension_numbers<[1], [0], [0], [1], [0, 0, 1, 1], [], []>} : vector<256x64xf32>, vector<64x128xf32>, vector<256x128xf32> -> vector<256x128xf32>
    %c0_10 = arith.constant 0 : index
    %c0_11 = arith.constant 0 : index
    %11 = vector.load %arg6[%c0_10, %c0_11] : memref<1x128xf32, #tpu.memory_space<vmem>>, vector<1x128xf32>
    %12 = vector.broadcast %11 : vector<1x128xf32> to vector<256x128xf32>
    %13 = arith.addf %10, %12 : vector<256x128xf32>
    %cst_12 = arith.constant 0.000000e+00 : f32
    %14 = vector.broadcast %cst_12 : f32 to vector<256x128xf32>
    %15 = arith.maximumf %13, %14 : vector<256x128xf32>
    %c0_13 = arith.constant 0 : index
    %c0_14 = arith.constant 0 : index
    %16 = vector.load %arg7[%c0_13, %c0_14] : memref<128x256xf32, #tpu.memory_space<vmem>>, vector<128x256xf32>
    %cst_15 = arith.constant dense<0.000000e+00> : vector<256x256xf32>
    %17 = tpu.matmul %15, %16, %cst_15 {dimension_numbers = #tpu.dot_dimension_numbers<[1], [0], [0], [1], [0, 0, 1, 1], [], []>} : vector<256x128xf32>, vector<128x256xf32>, vector<256x256xf32> -> vector<256x256xf32>
    %c0_16 = arith.constant 0 : index
    %c0_17 = arith.constant 0 : index
    %18 = vector.load %arg8[%c0_16, %c0_17] : memref<1x256xf32, #tpu.memory_space<vmem>>, vector<1x256xf32>
    %19 = vector.broadcast %18 : vector<1x256xf32> to vector<256x256xf32>
    %20 = arith.addf %17, %19 : vector<256x256xf32>
    %21 = vector.shape_cast %20 : vector<256x256xf32> to vector<2x128x256xf32>
    %cst_18 = arith.constant dense<0xFF800000> : vector<2x256xf32>
    %22 = vector.multi_reduction <maximumf>, %21, %cst_18 [1] : vector<2x128x256xf32> to vector<2x256xf32>
    %c0_i32 = arith.constant 0 : i32
    %23 = arith.cmpi eq, %arg1, %c0_i32 : i32
    %24 = arith.extui %23 : i1 to i32
    %c0_i32_19 = arith.constant 0 : i32
    %25 = arith.cmpi ne, %24, %c0_i32_19 : i32
    scf.if %25 {
      %c0_24 = arith.constant 0 : index
      %c0_25 = arith.constant 0 : index
      %32 = vector.load %arg12[%c0_24, %c0_25] : memref<2x256xf32, #tpu.memory_space<vmem>>, vector<2x256xf32>
      tpu.vector_store %arg12[%c0_24, %c0_25], %22 {strides = array<i32>} : memref<2x256xf32, #tpu.memory_space<vmem>>, vector<2x256xf32>,
    } else {
    }
    %c0_i32_20 = arith.constant 0 : i32
    %26 = arith.cmpi sgt, %arg1, %c0_i32_20 : i32
    %27 = arith.extui %26 : i1 to i32
    %c0_i32_21 = arith.constant 0 : i32
    %28 = arith.cmpi ne, %27, %c0_i32_21 : i32
    scf.if %28 {
      %c0_24 = arith.constant 0 : index
      %c0_25 = arith.constant 0 : index
      %32 = vector.load %arg12[%c0_24, %c0_25] : memref<2x256xf32, #tpu.memory_space<vmem>>, vector<2x256xf32>
      %33 = arith.maximumf %32, %22 : vector<2x256xf32>
      %c0_26 = arith.constant 0 : index
      %c0_27 = arith.constant 0 : index
      %34 = vector.load %arg12[%c0_26, %c0_27] : memref<2x256xf32, #tpu.memory_space<vmem>>, vector<2x256xf32>
      tpu.vector_store %arg12[%c0_26, %c0_27], %33 {strides = array<i32>} : memref<2x256xf32, #tpu.memory_space<vmem>>, vector<2x256xf32>,
    } else {
    }
    %c0_i32_22 = arith.constant 0 : i32
    %29 = arith.cmpi eq, %arg1, %c0_i32_22 : i32
    %30 = arith.extui %29 : i1 to i32
    %c0_i32_23 = arith.constant 0 : i32
    %31 = arith.cmpi ne, %30, %c0_i32_23 : i32
    scf.if %31 {
      %c0_24 = arith.constant 0 : index
      %c0_25 = arith.constant 0 : index
      %32 = vector.load %arg12[%c0_24, %c0_25] : memref<2x256xf32, #tpu.memory_space<vmem>>, vector<2x256xf32>
      %c0_26 = arith.constant 0 : index
      %c0_27 = arith.constant 0 : index
      %33 = vector.load %arg9[%c0_26, %c0_27] : memref<256x128xf32, #tpu.memory_space<vmem>>, vector<256x128xf32>
      %cst_28 = arith.constant dense<0.000000e+00> : vector<2x128xf32>
      %34 = tpu.matmul %32, %33, %cst_28 {dimension_numbers = #tpu.dot_dimension_numbers<[1], [0], [0], [1], [0, 0, 1, 1], [], []>} : vector<2x256xf32>, vector<256x128xf32>, vector<2x128xf32> -> vector<2x128xf32>
      %c0_29 = arith.constant 0 : index
      %c0_30 = arith.constant 0 : index
      %35 = vector.load %arg10[%c0_29, %c0_30] : memref<1x128xf32, #tpu.memory_space<vmem>>, vector<1x128xf32>
      %36 = vector.broadcast %35 : vector<1x128xf32> to vector<2x128xf32>
      %37 = arith.addf %34, %36 : vector<2x128xf32>
      %cst_31 = arith.constant 0.000000e+00 : f32
      %38 = vector.broadcast %cst_31 : f32 to vector<2x128xf32>
      %39 = arith.maximumf %37, %38 : vector<2x128xf32>
      %c0_32 = arith.constant 0 : index
      %c0_33 = arith.constant 0 : index
      %40 = vector.load %arg11[%c0_32, %c0_33] : memref<2x128xf32, #tpu.memory_space<vmem>>, vector<2x128xf32>
      tpu.vector_store %arg11[%c0_32, %c0_33], %39 {strides = array<i32>} : memref<2x128xf32, #tpu.memory_space<vmem>>, vector<2x128xf32>,
    } else {
    }
    return
  }
  func.func @transform_0(%arg0: i32, %arg1: i32) -> (i32, i32, i32) {
    %c0_i32 = arith.constant 0 : i32
    %c0_i32_0 = arith.constant 0 : i32
    return %arg0, %arg1, %c0_i32 : i32, i32, i32
  }
  func.func @transform_1(%arg0: i32, %arg1: i32) -> (i32, i32) {
    %c0_i32 = arith.constant 0 : i32
    %c0_i32_0 = arith.constant 0 : i32
    %c0_i32_1 = arith.constant 0 : i32
    return %c0_i32, %c0_i32_0 : i32, i32
  }
  func.func @transform_2(%arg0: i32, %arg1: i32) -> (i32, i32) {
    %c0_i32 = arith.constant 0 : i32
    %c0_i32_0 = arith.constant 0 : i32
    %c0_i32_1 = arith.constant 0 : i32
    return %c0_i32, %c0_i32_0 : i32, i32
  }
  func.func @transform_3(%arg0: i32, %arg1: i32) -> (i32, i32) {
    %c0_i32 = arith.constant 0 : i32
    %c0_i32_0 = arith.constant 0 : i32
    %c0_i32_1 = arith.constant 0 : i32
    return %c0_i32, %c0_i32_0 : i32, i32
  }
  func.func @transform_4(%arg0: i32, %arg1: i32) -> (i32, i32) {
    %c0_i32 = arith.constant 0 : i32
    %c0_i32_0 = arith.constant 0 : i32
    %c0_i32_1 = arith.constant 0 : i32
    return %c0_i32, %c0_i32_0 : i32, i32
  }
  func.func @transform_5(%arg0: i32, %arg1: i32) -> (i32, i32) {
    %c0_i32 = arith.constant 0 : i32
    %c0_i32_0 = arith.constant 0 : i32
    %c0_i32_1 = arith.constant 0 : i32
    return %c0_i32, %c0_i32_0 : i32, i32
  }
  func.func @transform_6(%arg0: i32, %arg1: i32) -> (i32, i32) {
    %c0_i32 = arith.constant 0 : i32
    %c0_i32_0 = arith.constant 0 : i32
    %c0_i32_1 = arith.constant 0 : i32
    return %c0_i32, %c0_i32_0 : i32, i32
  }
  func.func @transform_7(%arg0: i32, %arg1: i32) -> (i32, i32) {
    %c0_i32 = arith.constant 0 : i32
    %c0_i32_0 = arith.constant 0 : i32
    %c0_i32_1 = arith.constant 0 : i32
    return %c0_i32, %c0_i32_0 : i32, i32
  }
  func.func @transform_8(%arg0: i32, %arg1: i32) -> (i32, i32) {
    %c0_i32 = arith.constant 0 : i32
    %c0_i32_0 = arith.constant 0 : i32
    %c0_i32_1 = arith.constant 0 : i32
    return %c0_i32, %c0_i32_0 : i32, i32
  }
  func.func @transform_9(%arg0: i32, %arg1: i32) -> (i32, i32) {
    %c0_i32 = arith.constant 0 : i32
    %c0_i32_0 = arith.constant 0 : i32
    return %arg0, %c0_i32 : i32, i32
  }
}

</mosaic_0001>

<bundles_post_ra>
// kernel: tpu_custom_call.1
= control target key start
LH: loop header
LB: loop body
LE: loop exit
PB: predicated region body
PF: predicated region fallthrough
CT: control target
= control target key end

     0   :  { %14 = vsyncpa [#allocation4], 0  ;;  %s2568_s0 = inlined_call_operand.vmem [shape: f32[2,128,8], index: 0, kind: input, shape index: {}]   ;;  %s2569_s1 = inlined_call_operand.vmem [shape: f32[8,64], index: 1, kind: input, shape index: {}]   ;;  %s2570_s2 = inlined_call_operand.vmem [shape: f32[1,64], index: 2, kind: input, shape index: {}]   ;;  %s2571_s3 = inlined_call_operand.hbm [shape: f32[64,128], index: 3, kind: input, shape index: {}]   ;;  %s2572_s4 = inlined_call_operand.vmem [shape: f32[1,128], index: 4, kind: input, shape index: {}]   ;;  %s2573_s5 = inlined_call_operand.vmem [shape: f32[128,256], index: 5, kind: input, shape index: {}]   ;;  %s2574_s6 = inlined_call_operand.vmem [shape: f32[1,256], index: 6, kind: input, shape index: {}]   ;;  %s2575_s7 = inlined_call_operand.hbm [shape: f32[256,128], index: 7, kind: input, shape index: {}]   ;;  %s2576_s8 = inlined_call_operand.vmem [shape: f32[1,128], index: 8, kind: input, shape index: {}]   ;;  %s2577_s9 = inlined_call_operand.hbm [shape: f32[2,128], index: 9, kind: output, shape index: {}]  }
   0x1   :  { %15 = vsyncpa [#allocation7], 0 }
   0x2   :  { %16 = vsyncpa [#allocation5], 0  ;;  %s1896_s30 = smov [#allocation3]   ;;  %s1824_s13 = scalar_lea.hbm %s2571_s3, 1024 }
   0x3   :  { %s28_s10 = sshll.u32 %s1896_s30, 4  ;;  %p1825_p0 = scmp.ne.s32.totalorder %s2571_s3, %s1824_s13  ;;  %s29_s10 = int_to_ptr.vmem [resolvable:$true] %s28_s10 }
   0x4   :  { %p1828_p1 = scmp.lt.u32.totalorder %s1824_s13, %s2571_s3 }
   0x6   :  { %p1830_p2 = pnand %p1828_p1, %p1825_p0 }
   0x8   :  { %1833 = shalt.err (!%p1830_p2)
}
   0x9   :  { %s1834_s18 = scalar_lea.vmem %s29_s10, 1024  ;;  %p1839_p4 = scmp.lt.s32.totalorder %s29_s10, %s29_s10 }
   0xa   :  { %p1835_p3 = scmp.ne.s32.totalorder %s29_s10, %s1834_s18  ;;  %p1840_p5 = scmp.lt.s32.totalorder %s1834_s18, %s1834_s18 }
   0xc   :  { %p1841_p6 = por %p1840_p5, %p1839_p4 }
   0xe   :  { %p1842_p7 = pnand %p1841_p6, %p1835_p3 }
  0x10   :  { %1845 = shalt.err (!%p1842_p7)
}
  0x11   :  { %s1897_s19 = smov 128   ;;  %s1898_s20 = smov 8  }
  0x12   :  { %34 = dma.hbm_to_vmem [thread:$0]  %s2571_s3, 1024, %s29_s10, [#allocation4], %s1897_s19, %s1897_s19, %s1898_s20  }
  0x13   :  { %s1899_s23 = smov [#allocation6]   ;;  %s1846_s27 = scalar_lea.hbm %s2575_s7, 4096 }
  0x14   :  { %s46_s24 = sshll.u32 %s1899_s23, 4  ;;  %p1847_p8 = scmp.ne.s32.totalorder %s2575_s7, %s1846_s27  ;;  %s47_s24 = int_to_ptr.vmem [resolvable:$true] %s46_s24 }
  0x15   :  { %p1850_p9 = scmp.lt.u32.totalorder %s1846_s27, %s2575_s7 }
  0x17   :  { %p1852_p10 = pnand %p1850_p9, %p1847_p8 }
  0x19   :  { %1855 = shalt.err (!%p1852_p10)
}
  0x1a   :  { %s1856_s12 = scalar_lea.vmem %s47_s24, 4096  ;;  %p1861_p12 = scmp.lt.s32.totalorder %s47_s24, %s47_s24 }
  0x1b   :  { %p1857_p11 = scmp.ne.s32.totalorder %s47_s24, %s1856_s12  ;;  %p1862_p13 = scmp.lt.s32.totalorder %s1856_s12, %s1856_s12 }
  0x1d   :  { %p1863_p0 = por %p1862_p13, %p1861_p12 }
  0x1f   :  { %p1864_p1 = pnand %p1863_p0, %p1857_p11 }
  0x21   :  { %1867 = shalt.err (!%p1864_p1)
}
  0x22   :  { %52 = dma.hbm_to_vmem [thread:$0]  %s2575_s7, 4096, %s47_s24, [#allocation7], %s1897_s19, %s1897_s19, %s1898_s20  }
  0x23   :  { %1890 = dma.done.wait [#allocation4], 1024  }
  0x24   :  { %1891 = vsyncadd [#allocation4], 4294966272 }
  0x25   :  { %1892 = dma.done.wait [#allocation7], 4096  }
  0x26   :  { %1893 = vsyncadd [#allocation7], 4294963200  ;;  %vm101_vm0 = vcmask 64512   ;;  %v93_v0 = vld [vmem:[%s2569_s1] sm:$0xff]  ;;  %v62_v2 = vld [vmem:[%s2568_s0 + $0x8] sm:$0xff]  ;;  %vm470_vm1 = vcmask 523264  }
  0x27   :  { %v61_v1 = vld [vmem:[%s2568_s0] sm:$0xff]  ;;  %1607 = vmatprep.subr.mxu0 %v93_v0  ;;  %v63_v3 = vld [vmem:[%s2568_s0 + $0x10] sm:$0xff]  ;;  %v64_v4 = vld [vmem:[%s2568_s0 + $0x18] sm:$0xff]  ;;  %vm1238_vm2 = vcmask 1041409   ;;  %vm1240_vm3 = vcmask 1043459   ;;  %vm1242_vm4 = vcmask 1045509  }
  0x28   :  { %1609 = vmatprep.mubr.msk.f32.mxu0 %vm101_vm0, %v61_v1  ;;  %1608 = vmatpush3.msra.mxu0 %v93_v0  ;;  %v65_v5 = vld [vmem:[%s2568_s0 + $0x20] sm:$0xff]  ;;  %v66_v6 = vld [vmem:[%s2568_s0 + $0x28] sm:$0xff]  ;;  %v67_v7 = vld [vmem:[%s2568_s0 + $0x30] sm:$0xff]  ;;  %vm1244_vm5 = vcmask 1047559   ;;  %s1902_s22 = smov [#allocation8]  }
  0x29   :  { %1610 = vmatmul.mubr.msk.f32.vlgmr.msra.gmra.mrb[0].mxu0 %vm101_vm0, %v62_v2  ;;  %v455_v8 = vld [vmem:[#allocation3] sm:$0xff]  ;;  %v456_v9 = vld [vmem:[#allocation3 + $0x8] sm:$0xff]  ;;  %v457_v10 = vld [vmem:[#allocation3 + $0x10] sm:$0xff]  ;;  %s1421_s23 = sshll.u32 %s1902_s22, 4  ;;  %s1422_s23 = int_to_ptr.vmem [resolvable:$true] %s1421_s23 }
  0x2a   :  { %1612 = vmatprep.mubr.msk.f32.mxu0 %vm101_vm0, %v63_v3  ;;  %v68_v11 = vld [vmem:[%s2568_s0 + $0x38] sm:$0xff]  ;;  %v1721_v12 = vpack.c.bf16 %v456_v9, %v455_v8  ;;  %v69_v14 = vld [vmem:[%s2568_s0 + $0x40] sm:$0xff]  ;;  %v460_v17 = vld [vmem:[#allocation3 + $0x28] sm:$0xff]  ;;  %s1868_s24 = scalar_lea.vmem %s1422_s23, 32  ;;  %p1873_p3 = scmp.lt.s32.totalorder %s1422_s23, %s1422_s23 }
  0x2b   :  { %v458_v13 = vld [vmem:[#allocation3 + $0x18] sm:$0xff]  ;;  %v459_v16 = vld [vmem:[#allocation3 + $0x20] sm:$0xff]  ;;  %v71_v20 = vld [vmem:[%s2568_s0 + $0x50] sm:$0xff]  ;;  %p1869_p2 = scmp.ne.s32.totalorder %s1422_s23, %s1868_s24  ;;  %p1874_p4 = scmp.lt.s32.totalorder %s1868_s24, %s1868_s24 }
  0x2c   :  { %v1725_v15 = vpack.c.bf16 %v458_v13, %v457_v10  ;;  %1722 = vmatprep.subr.bf16.mxu1 %v1721_v12  ;;  %v70_v18 = vld [vmem:[%s2568_s0 + $0x48] sm:$0xff]  ;;  %v1729_v19 = vpack.c.bf16 %v460_v17, %v459_v16  ;;  %v72_v21 = vld [vmem:[%s2568_s0 + $0x58] sm:$0xff]  ;;  %v73_v22 = vld [vmem:[%s2568_s0 + $0x60] sm:$0xff] }
  0x2d   :  { %1613 = vmatmul.mubr.msk.f32.gmra.mrb[2].mxu0 %vm101_vm0, %v64_v4  ;;  %1724 = vmatpush3.bf16.msra.mxu1 %v1721_v12  ;;  %v74_v23 = vld [vmem:[%s2568_s0 + $0x68] sm:$0xff]  ;;  %v75_v24 = vld [vmem:[%s2568_s0 + $0x70] sm:$0xff]  ;;  %v76_v25 = vld [vmem:[%s2568_s0 + $0x78] sm:$0xff]  ;;  %p1875_p5 = por %p1874_p4, %p1873_p3 }
  0x2e   :  { %1615 = vmatprep.mubr.msk.f32.mxu0 %vm101_vm0, %v65_v5  ;;  %1726 = vmatprep.subr.bf16.mxu1 %v1725_v15  ;;  %v77_v26 = vld [vmem:[%s2568_s0 + $0x80] sm:$0xff]  ;;  %v78_v27 = vld [vmem:[%s2568_s0 + $0x88] sm:$0xff]  ;;  %v79_v28 = vld [vmem:[%s2568_s0 + $0x90] sm:$0xff] }
  0x2f   :  { %v80_v29 = vld [vmem:[%s2568_s0 + $0x98] sm:$0xff]  ;;  %v81_v30 = vld [vmem:[%s2568_s0 + $0xa0] sm:$0xff]  ;;  %v82_v31 = vld [vmem:[%s2568_s0 + $0xa8] sm:$0xff]  ;;  %p1876_p6 = pnand %p1875_p5, %p1869_p2 }
  0x30   :  { %v83_v32 = vld [vmem:[%s2568_s0 + $0xb0] sm:$0xff]  ;;  %v84_v33 = vld [vmem:[%s2568_s0 + $0xb8] sm:$0xff]  ;;  %v85_v34 = vld [vmem:[%s2568_s0 + $0xc0] sm:$0xff] }
  0x31   :  { %1616 = vmatmul.mubr.msk.f32.gmra.mrb[4].mxu0 %vm101_vm0, %v66_v6  ;;  %1728 = vmatpush3.bf16.msra.mxu1 %v1725_v15  ;;  %v86_v35 = vld [vmem:[%s2568_s0 + $0xc8] sm:$0xff]  ;;  %v87_v36 = vld [vmem:[%s2568_s0 + $0xd0] sm:$0xff]  ;;  %v88_v37 = vld [vmem:[%s2568_s0 + $0xd8] sm:$0xff] }
  0x32   :  { %1618 = vmatprep.mubr.msk.f32.mxu0 %vm101_vm0, %v67_v7  ;;  %1730 = vmatprep.subr.bf16.mxu1 %v1729_v19  ;;  %v89_v38 = vld [vmem:[%s2568_s0 + $0xe0] sm:$0xff]  ;;  %v90_v39 = vld [vmem:[%s2568_s0 + $0xe8] sm:$0xff]  ;;  %v91_v40 = vld [vmem:[%s2568_s0 + $0xf0] sm:$0xff] }
  0x33   :  { %v92_v41 = vld [vmem:[%s2568_s0 + $0xf8] sm:$0xff]  ;;  %v825_v45 = vld [vmem:[%s2573_s5 + $0x8] sm:$0xff]  ;;  %v824_v47 = vld [vmem:[%s2573_s5] sm:$0xff] }
  0x34   :  { %v461_v42 = vld [vmem:[#allocation3 + $0x30] sm:$0xff]  ;;  %v462_v43 = vld [vmem:[#allocation3 + $0x38] sm:$0xff]  ;;  %v829_v50 = vld [vmem:[%s2573_s5 + $0x28] sm:$0xff] }
  0x35   :  { %1619 = vmatmul.mubr.msk.f32.gmra.mrb[6].mxu0 %vm101_vm0, %v68_v11  ;;  %1732 = vmatpush3.bf16.msra.mxu1 %v1729_v19  ;;  %v1733_v44 = vpack.c.bf16 %v462_v43, %v461_v42  ;;  %v827_v46 = vld [vmem:[%s2573_s5 + $0x18] sm:$0xff]  ;;  %v826_v49 = vld [vmem:[%s2573_s5 + $0x10] sm:$0xff]  ;;  %v828_v54 = vld [vmem:[%s2573_s5 + $0x20] sm:$0xff] }
  0x36   :  { %1621 = vmatprep.mubr.msk.f32.mxu0 %vm101_vm0, %v69_v14  ;;  %v1737_v48 = vpack.c.bf16 %v827_v46, %v825_v45  ;;  %v831_v51 = vld [vmem:[%s2573_s5 + $0x38] sm:$0xff]  ;;  %v2126_v52 = vpack.c.bf16 %v826_v49, %v824_v47  ;;  %v830_v55 = vld [vmem:[%s2573_s5 + $0x30] sm:$0xff]  ;;  %v833_v56 = vld [vmem:[%s2573_s5 + $0x48] sm:$0xff] }
  0x37   :  { %1734 = vmatprep.subr.bf16.mxu1 %v1733_v44  ;;  %v2128_v53 = vpack.c.bf16 %v831_v51, %v829_v50  ;;  %v835_v57 = vld [vmem:[%s2573_s5 + $0x58] sm:$0xff]  ;;  %v2143_v58 = vpack.c.bf16 %v830_v55, %v828_v54  ;;  %v832_v60 = vld [vmem:[%s2573_s5 + $0x40] sm:$0xff]  ;;  %v834_v61 = vld [vmem:[%s2573_s5 + $0x50] sm:$0xff] }
  0x38   :  { %1738 = vmatprep.subr.bf16.mxu0 %v1737_v48  ;;  %v2146_v59 = vpack.c.bf16 %v835_v57, %v833_v56  ;;  %v837_v62 = vld [vmem:[%s2573_s5 + $0x68] sm:$0xff]  ;;  %v839_v63 = vld [vmem:[%s2573_s5 + $0x78] sm:$0xff]  ;;  %v2161_v0 = vpack.c.bf16 %v834_v61, %v832_v60  ;;  %v836_v2 = vld [vmem:[%s2573_s5 + $0x60] sm:$0xff] }
  0x39   :  { %1622 = vmatmul.mubr.msk.f32.gmra.mrb[8].mxu0 %vm101_vm0, %v70_v18  ;;  %1736 = vmatpush3.bf16.msra.mxu1 %v1733_v44  ;;  %v2164_v1 = vpack.c.bf16 %v839_v63, %v837_v62  ;;  %v838_v3 = vld [vmem:[%s2573_s5 + $0x70] sm:$0xff]  ;;  %v841_v4 = vld [vmem:[%s2573_s5 + $0x88] sm:$0xff]  ;;  %v843_v5 = vld [vmem:[%s2573_s5 + $0x98] sm:$0xff] }
  0x3a   :  { %1624 = vmatprep.mubr.msk.f32.mxu0 %vm101_vm0, %v71_v20  ;;  %1801 = vmatprep.subr.bf16.mxu1 %v1737_v48  ;;  %v2179_v6 = vpack.c.bf16 %v838_v3, %v836_v2  ;;  %v2182_v7 = vpack.c.bf16 %v843_v5, %v841_v4  ;;  %v840_v8 = vld [vmem:[%s2573_s5 + $0x80] sm:$0xff]  ;;  %v842_v9 = vld [vmem:[%s2573_s5 + $0x90] sm:$0xff]  ;;  %v845_v10 = vld [vmem:[%s2573_s5 + $0xa8] sm:$0xff] }
  0x3b   :  { %1740 = vmatpush1.bf16.msra.mxu0 %v2126_v52  ;;  %v847_v11 = vld [vmem:[%s2573_s5 + $0xb8] sm:$0xff]  ;;  %v2197_v12 = vpack.c.bf16 %v842_v9, %v840_v8  ;;  %v844_v14 = vld [vmem:[%s2573_s5 + $0xa0] sm:$0xff]  ;;  %v846_v15 = vld [vmem:[%s2573_s5 + $0xb0] sm:$0xff] }
  0x3c   :  { %1742 = vmatprep.subr.bf16.mxu0 %v2128_v53  ;;  %v2200_v13 = vpack.c.bf16 %v847_v11, %v845_v10  ;;  %v849_v16 = vld [vmem:[%s2573_s5 + $0xc8] sm:$0xff]  ;;  %v851_v17 = vld [vmem:[%s2573_s5 + $0xd8] sm:$0xff]  ;;  %v2215_v18 = vpack.c.bf16 %v846_v15, %v844_v14  ;;  %v848_v20 = vld [vmem:[%s2573_s5 + $0xc0] sm:$0xff] }
  0x3d   :  { %1625 = vmatmul.mubr.msk.f32.gmra.mrb[10].mxu0 %vm101_vm0, %v72_v21  ;;  %v2218_v19 = vpack.c.bf16 %v851_v17, %v849_v16  ;;  %v850_v21 = vld [vmem:[%s2573_s5 + $0xd0] sm:$0xff] }
  0x3e   :  { %1627 = vmatprep.mubr.msk.f32.mxu0 %vm101_vm0, %v73_v22  ;;  %v853_v22 = vld [vmem:[%s2573_s5 + $0xe8] sm:$0xff] }
  0x3f   :  { %1744 = vmatpush1.bf16.msra.mxu0 %v2143_v58 }
  0x40   :  { %1746 = vmatprep.subr.bf16.mxu0 %v2146_v59 }
  0x41   :  { %1628 = vmatmul.mubr.msk.f32.gmra.mrb[12].mxu0 %vm101_vm0, %v74_v23  ;;  %v855_v23 = vld [vmem:[%s2573_s5 + $0xf8] sm:$0xff] }
  0x42   :  { %1630 = vmatprep.mubr.msk.f32.mxu0 %vm101_vm0, %v75_v24  ;;  %v2233_v24 = vpack.c.bf16 %v850_v21, %v848_v20 }
  0x43   :  { %1748 = vmatpush1.bf16.msra.mxu0 %v2161_v0 }
  0x44   :  { %1750 = vmatprep.subr.bf16.mxu0 %v2164_v1 }
  0x45   :  { %1631 = vmatmul.mubr.msk.f32.gmra.mrb[14].mxu0 %vm101_vm0, %v76_v25  ;;  %v2236_v25 = vpack.c.bf16 %v855_v23, %v853_v22 }
  0x46   :  { %1633 = vmatprep.mubr.msk.f32.mxu0 %vm101_vm0, %v77_v26  ;;  %v852_v26 = vld [vmem:[%s2573_s5 + $0xe0] sm:$0xff] }
  0x47   :  { %1752 = vmatpush1.bf16.msra.mxu0 %v2179_v6 }
  0x48   :  { %1754 = vmatprep.subr.bf16.mxu0 %v2182_v7 }
  0x49   :  { %1634 = vmatmul.mubr.msk.f32.gmra.mrb[16].mxu0 %vm101_vm0, %v78_v27  ;;  %v854_v27 = vld [vmem:[%s2573_s5 + $0xf0] sm:$0xff] }
  0x4a   :  { %1636 = vmatprep.mubr.msk.f32.mxu0 %vm101_vm0, %v79_v28  ;;  %v2245_v28 = vpack.c.bf16 %v854_v27, %v852_v26 }
  0x4b   :  { %1756 = vmatpush1.bf16.msra.mxu0 %v2197_v12 }
  0x4c   :  { %1758 = vmatprep.subr.bf16.mxu0 %v2200_v13 }
  0x4d   :  { %1637 = vmatmul.mubr.msk.f32.gmra.mrb[18].mxu0 %vm101_vm0, %v80_v29  ;;  %v2252_v29 = vld [vmem:[%s2570_s2] ss:$0 sm:$0xff] }
  0x4e   :  { %1639 = vmatprep.mubr.msk.f32.mxu0 %vm101_vm0, %v81_v30 }
  0x4f   :  { %1760 = vmatpush1.bf16.msra.mxu0 %v2215_v18 }
  0x50   :  { %1762 = vmatprep.subr.bf16.mxu0 %v2218_v19 }
  0x51   :  { %1640 = vmatmul.mubr.msk.f32.gmra.mrb[20].mxu0 %vm101_vm0, %v82_v31 }
  0x52   :  { %1642 = vmatprep.mubr.msk.f32.mxu0 %vm101_vm0, %v83_v32 }
  0x53   :  { %1764 = vmatpush1.bf16.msra.mxu0 %v2233_v24 }
  0x54   :  { %1766 = vmatprep.subr.bf16.mxu0 %v2236_v25 }
  0x55   :  { %1643 = vmatmul.mubr.msk.f32.gmra.mrb[22].mxu0 %vm101_vm0, %v84_v33 }
  0x56   :  { %1645 = vmatprep.mubr.msk.f32.mxu0 %vm101_vm0, %v85_v34 }
  0x57   :  { %1768 = vmatpush1.bf16.msra.mxu0 %v2245_v28 }
  0x59   :  { %1646 = vmatmul.mubr.msk.f32.gmra.mrb[24].mxu0 %vm101_vm0, %v86_v35 }
  0x5a   :  { %1648 = vmatprep.mubr.msk.f32.mxu0 %vm101_vm0, %v87_v36 }
  0x5d   :  { %1649 = vmatmul.mubr.msk.f32.gmra.mrb[26].mxu0 %vm101_vm0, %v88_v37 }
  0x5e   :  { %1651 = vmatprep.mubr.msk.f32.mxu0 %vm101_vm0, %v89_v38 }
  0x61   :  { %1652 = vmatmul.mubr.msk.f32.gmra.mrb[28].mxu0 %vm101_vm0, %v90_v39 }
  0x62   :  { %1654 = vmatprep.mubr.msk.f32.mxu0 %vm101_vm0, %v91_v40 }
  0x65   :  { %1655 = vmatmul.mubr.msk.f32.gmra.mrb[30].mxu0 %vm101_vm0, %v92_v41 }
  0xfc   :  { %v1611_v30 = vpop.f32.mrb[0].mxu0 }
  0xfd   :  { %v270_v31 = vadd.f32 %v1611_v30, %v2252_v29  ;;  %v264_v32 = vpop.f32.mrb[1].mxu0 }
  0xfe   :  { %v265_v33 = vadd.f32 %v2252_v29, %v264_v32 }
  0xff   :  { %v424_v36 = vmax.f32 %v270_v31, 0.0 }
 0x100   :  { %v423_v34 = vmax.f32 %v265_v33, 0.0  ;;  %v1614_v35 = vpop.f32.mrb[2].mxu0 }
 0x101   :  { %v280_v37 = vadd.f32 %v1614_v35, %v2252_v29  ;;  %v274_v38 = vpop.f32.mrb[3].mxu0 }
 0x102   :  { %v275_v39 = vadd.f32 %v2252_v29, %v274_v38  ;;  %1673 = vmatprep.mubr.msk.f32.mxu1 %vm470_vm1, %v423_v34 }
 0x103   :  { %v426_v40 = vmax.f32 %v280_v37, 0.0  ;;  %1674 = vmatmul.mubr.msk.f32.vlgmr.msra.gmra.mrb[0].mxu1 %vm470_vm1, %v424_v36 }
 0x104   :  { %v425_v41 = vmax.f32 %v275_v39, 0.0  ;;  %v1617_v42 = vpop.f32.mrb[4].mxu0  ;;  %1809 = vmatpush1.bf16.msra.mxu1 %v2126_v52 }
 0x105   :  { %v290_v43 = vadd.f32 %v1617_v42, %v2252_v29  ;;  %v284_v44 = vpop.f32.mrb[5].mxu0  ;;  %1802 = vmatprep.subr.bf16.mxu1 %v2128_v53 }
 0x106   :  { %1676 = vmatprep.mubr.msk.f32.mxu1 %vm470_vm1, %v425_v41  ;;  %v285_v45 = vadd.f32 %v2252_v29, %v284_v44 }
 0x107   :  { %1677 = vmatmul.mubr.msk.f32.gmra.mrb[2].mxu1 %vm470_vm1, %v426_v40  ;;  %v428_v46 = vmax.f32 %v290_v43, 0.0 }
 0x108   :  { %v427_v47 = vmax.f32 %v285_v45, 0.0  ;;  %v1620_v48 = vpop.f32.mrb[6].mxu0  ;;  %1810 = vmatpush1.bf16.msra.mxu1 %v2143_v58 }
 0x109   :  { %v300_v49 = vadd.f32 %v1620_v48, %v2252_v29  ;;  %v294_v50 = vpop.f32.mrb[7].mxu0  ;;  %1803 = vmatprep.subr.bf16.mxu1 %v2146_v59 }
 0x10a   :  { %v295_v51 = vadd.f32 %v2252_v29, %v294_v50  ;;  %1679 = vmatprep.mubr.msk.f32.mxu1 %vm470_vm1, %v427_v47 }
 0x10b   :  { %v430_v52 = vmax.f32 %v300_v49, 0.0  ;;  %1680 = vmatmul.mubr.msk.f32.gmra.mrb[4].mxu1 %vm470_vm1, %v428_v46 }
 0x10c   :  { %v429_v53 = vmax.f32 %v295_v51, 0.0  ;;  %v1623_v54 = vpop.f32.mrb[8].mxu0  ;;  %1811 = vmatpush1.bf16.msra.mxu1 %v2161_v0 }
 0x10d   :  { %v310_v55 = vadd.f32 %v1623_v54, %v2252_v29  ;;  %v304_v56 = vpop.f32.mrb[9].mxu0  ;;  %1804 = vmatprep.subr.bf16.mxu1 %v2164_v1 }
 0x10e   :  { %v305_v57 = vadd.f32 %v2252_v29, %v304_v56  ;;  %1682 = vmatprep.mubr.msk.f32.mxu1 %vm470_vm1, %v429_v53 }
 0x10f   :  { %v432_v58 = vmax.f32 %v310_v55, 0.0  ;;  %1683 = vmatmul.mubr.msk.f32.gmra.mrb[6].mxu1 %vm470_vm1, %v430_v52 }
 0x110   :  { %v431_v59 = vmax.f32 %v305_v57, 0.0  ;;  %v1626_v60 = vpop.f32.mrb[10].mxu0  ;;  %1812 = vmatpush1.bf16.msra.mxu1 %v2179_v6 }
 0x111   :  { %v320_v61 = vadd.f32 %v1626_v60, %v2252_v29  ;;  %v314_v62 = vpop.f32.mrb[11].mxu0  ;;  %1805 = vmatprep.subr.bf16.mxu1 %v2182_v7 }
 0x112   :  { %v315_v63 = vadd.f32 %v2252_v29, %v314_v62  ;;  %1685 = vmatprep.mubr.msk.f32.mxu1 %vm470_vm1, %v431_v59 }
 0x113   :  { %v434_v0 = vmax.f32 %v320_v61, 0.0  ;;  %1686 = vmatmul.mubr.msk.f32.gmra.mrb[8].mxu1 %vm470_vm1, %v432_v58 }
 0x114   :  { %v433_v1 = vmax.f32 %v315_v63, 0.0  ;;  %v1629_v2 = vpop.f32.mrb[12].mxu0  ;;  %1813 = vmatpush1.bf16.msra.mxu1 %v2197_v12  ;;  %v1900_v63 = vmov 0.0  }
 0x115   :  { %v330_v3 = vadd.f32 %v1629_v2, %v2252_v29  ;;  %v324_v4 = vpop.f32.mrb[13].mxu0  ;;  %1806 = vmatprep.subr.bf16.mxu1 %v2200_v13  ;;  %932 = vmatprep.mubr.f32.mxu0 %v1900_v63 }
 0x116   :  { %v325_v5 = vadd.f32 %v2252_v29, %v324_v4  ;;  %1688 = vmatprep.mubr.msk.f32.mxu1 %vm470_vm1, %v433_v1 }
 0x117   :  { %v436_v6 = vmax.f32 %v330_v3, 0.0  ;;  %1689 = vmatmul.mubr.msk.f32.gmra.mrb[10].mxu1 %vm470_vm1, %v434_v0  ;;  %v2338_v0 = vld [vmem:[%s2572_s4] ss:$0 sm:$0xff] }
 0x118   :  { %v435_v7 = vmax.f32 %v325_v5, 0.0  ;;  %v1632_v8 = vpop.f32.mrb[14].mxu0  ;;  %1814 = vmatpush1.bf16.msra.mxu1 %v2215_v18 }
 0x119   :  { %v340_v9 = vadd.f32 %v1632_v8, %v2252_v29  ;;  %v334_v10 = vpop.f32.mrb[15].mxu0  ;;  %1807 = vmatprep.subr.bf16.mxu1 %v2218_v19 }
 0x11a   :  { %v335_v11 = vadd.f32 %v2252_v29, %v334_v10  ;;  %1691 = vmatprep.mubr.msk.f32.mxu1 %vm470_vm1, %v435_v7 }
 0x11b   :  { %v438_v12 = vmax.f32 %v340_v9, 0.0  ;;  %1692 = vmatmul.mubr.msk.f32.gmra.mrb[12].mxu1 %vm470_vm1, %v436_v6 }
 0x11c   :  { %v437_v13 = vmax.f32 %v335_v11, 0.0  ;;  %v1635_v14 = vpop.f32.mrb[16].mxu0  ;;  %1815 = vmatpush1.bf16.msra.mxu1 %v2233_v24 }
 0x11d   :  { %v350_v15 = vadd.f32 %v1635_v14, %v2252_v29  ;;  %v344_v16 = vpop.f32.mrb[17].mxu0  ;;  %1808 = vmatprep.subr.bf16.mxu1 %v2236_v25 }
 0x11e   :  { %v345_v17 = vadd.f32 %v2252_v29, %v344_v16  ;;  %1694 = vmatprep.mubr.msk.f32.mxu1 %vm470_vm1, %v437_v13 }
 0x11f   :  { %v440_v18 = vmax.f32 %v350_v15, 0.0  ;;  %1695 = vmatmul.mubr.msk.f32.gmra.mrb[14].mxu1 %vm470_vm1, %v438_v12 }
 0x120   :  { %v439_v19 = vmax.f32 %v345_v17, 0.0  ;;  %v1638_v20 = vpop.f32.mrb[18].mxu0  ;;  %1816 = vmatpush1.bf16.msra.mxu1 %v2245_v28 }
 0x121   :  { %v360_v21 = vadd.f32 %v1638_v20, %v2252_v29  ;;  %v354_v22 = vpop.f32.mrb[19].mxu0 }
 0x122   :  { %v355_v23 = vadd.f32 %v2252_v29, %v354_v22  ;;  %1697 = vmatprep.mubr.msk.f32.mxu1 %vm470_vm1, %v439_v19 }
 0x123   :  { %v442_v24 = vmax.f32 %v360_v21, 0.0  ;;  %1698 = vmatmul.mubr.msk.f32.gmra.mrb[16].mxu1 %vm470_vm1, %v440_v18 }
 0x124   :  { %v441_v25 = vmax.f32 %v355_v23, 0.0  ;;  %v1641_v26 = vpop.f32.mrb[20].mxu0 }
 0x125   :  { %v370_v27 = vadd.f32 %v1641_v26, %v2252_v29  ;;  %v364_v30 = vpop.f32.mrb[21].mxu0 }
 0x126   :  { %v365_v31 = vadd.f32 %v2252_v29, %v364_v30  ;;  %1700 = vmatprep.mubr.msk.f32.mxu1 %vm470_vm1, %v441_v25 }
 0x127   :  { %v444_v28 = vmax.f32 %v370_v27, 0.0  ;;  %1701 = vmatmul.mubr.msk.f32.gmra.mrb[18].mxu1 %vm470_vm1, %v442_v24 }
 0x128   :  { %v443_v32 = vmax.f32 %v365_v31, 0.0  ;;  %v1644_v33 = vpop.f32.mrb[22].mxu0 }
 0x129   :  { %v380_v34 = vadd.f32 %v1644_v33, %v2252_v29  ;;  %v374_v35 = vpop.f32.mrb[23].mxu0 }
 0x12a   :  { %1703 = vmatprep.mubr.msk.f32.mxu1 %vm470_vm1, %v443_v32  ;;  %v375_v36 = vadd.f32 %v2252_v29, %v374_v35 }
 0x12b   :  { %1704 = vmatmul.mubr.msk.f32.gmra.mrb[20].mxu1 %vm470_vm1, %v444_v28  ;;  %v446_v37 = vmax.f32 %v380_v34, 0.0 }
 0x12c   :  { %v445_v38 = vmax.f32 %v375_v36, 0.0  ;;  %v1647_v39 = vpop.f32.mrb[24].mxu0 }
 0x12d   :  { %v390_v40 = vadd.f32 %v1647_v39, %v2252_v29  ;;  %v384_v41 = vpop.f32.mrb[25].mxu0 }
 0x12e   :  { %1706 = vmatprep.mubr.msk.f32.mxu1 %vm470_vm1, %v445_v38  ;;  %v385_v42 = vadd.f32 %v2252_v29, %v384_v41 }
 0x12f   :  { %1707 = vmatmul.mubr.msk.f32.gmra.mrb[22].mxu1 %vm470_vm1, %v446_v37  ;;  %v448_v43 = vmax.f32 %v390_v40, 0.0 }
 0x130   :  { %v447_v44 = vmax.f32 %v385_v42, 0.0  ;;  %v1650_v45 = vpop.f32.mrb[26].mxu0 }
 0x131   :  { %v400_v46 = vadd.f32 %v1650_v45, %v2252_v29  ;;  %v394_v47 = vpop.f32.mrb[27].mxu0 }
 0x132   :  { %1709 = vmatprep.mubr.msk.f32.mxu1 %vm470_vm1, %v447_v44  ;;  %v395_v48 = vadd.f32 %v2252_v29, %v394_v47 }
 0x133   :  { %1710 = vmatmul.mubr.msk.f32.gmra.mrb[24].mxu1 %vm470_vm1, %v448_v43  ;;  %v450_v49 = vmax.f32 %v400_v46, 0.0 }
 0x134   :  { %v449_v50 = vmax.f32 %v395_v48, 0.0  ;;  %v1653_v51 = vpop.f32.mrb[28].mxu0 }
 0x135   :  { %v410_v52 = vadd.f32 %v1653_v51, %v2252_v29  ;;  %v404_v53 = vpop.f32.mrb[29].mxu0 }
 0x136   :  { %1712 = vmatprep.mubr.msk.f32.mxu1 %vm470_vm1, %v449_v50  ;;  %v405_v54 = vadd.f32 %v2252_v29, %v404_v53 }
 0x137   :  { %1713 = vmatmul.mubr.msk.f32.gmra.mrb[26].mxu1 %vm470_vm1, %v450_v49  ;;  %v452_v55 = vmax.f32 %v410_v52, 0.0 }
 0x138   :  { %v451_v56 = vmax.f32 %v405_v54, 0.0  ;;  %v1656_v57 = vpop.f32.mrb[30].mxu0 }
 0x139   :  { %v420_v58 = vadd.f32 %v1656_v57, %v2252_v29  ;;  %v414_v59 = vpop.f32.mrb[31].mxu0 }
 0x13a   :  { %1715 = vmatprep.mubr.msk.f32.mxu1 %vm470_vm1, %v451_v56  ;;  %v415_v60 = vadd.f32 %v2252_v29, %v414_v59 }
 0x13b   :  { %1716 = vmatmul.mubr.msk.f32.gmra.mrb[28].mxu1 %vm470_vm1, %v452_v55  ;;  %v454_v61 = vmax.f32 %v420_v58, 0.0 }
 0x13c   :  { %v453_v62 = vmax.f32 %v415_v60, 0.0 }
 0x13e   :  { %1718 = vmatprep.mubr.msk.f32.mxu1 %vm470_vm1, %v453_v62 }
 0x13f   :  { %1719 = vmatmul.mubr.msk.f32.gmra.mrb[30].mxu1 %vm470_vm1, %v454_v61 }
 0x140   :  { %1046 = vmatprep.mubr.f32.mxu1 %v1900_v63 }
 0x1d6   :  { %v1675_v1 = vpop.f32.mrb[0].mxu1 }
 0x1d7   :  { %v633_v29 = vpop.f32.mrb[1].mxu1  ;;  %v639_v3 = vadd.f32 %v1675_v1, %v2338_v0 }
 0x1d8   :  { %v634_v2 = vadd.f32 %v2338_v0, %v633_v29 }
 0x1d9   :  { %v793_v7 = vmax.f32 %v639_v3, 0.0 }
 0x1da   :  { %v792_v4 = vmax.f32 %v634_v2, 0.0  ;;  %v1678_v5 = vpop.f32.mrb[2].mxu1 }
 0x1db   :  { %v643_v6 = vpop.f32.mrb[3].mxu1  ;;  %v649_v11 = vadd.f32 %v1678_v5, %v2338_v0 }
 0x1dc   :  { %933 = vmatmul.mubr.f32.vlgmr.msra.gmra.mrb[32].mxu0 %v792_v4  ;;  %v644_v8 = vadd.f32 %v2338_v0, %v643_v6 }
 0x1dd   :  { %938 = vmatprep.mubr.f32.mxu0 %v1900_v63  ;;  %v795_v15 = vmax.f32 %v649_v11, 0.0 }
 0x1de   :  { %v1681_v9 = vpop.f32.mrb[4].mxu1  ;;  %v794_v12 = vmax.f32 %v644_v8, 0.0 }
 0x1df   :  { %v653_v10 = vpop.f32.mrb[5].mxu1  ;;  %v659_v19 = vadd.f32 %v1681_v9, %v2338_v0 }
 0x1e0   :  { %939 = vmatmul.mubr.f32.gmra.mrb[34].mxu0 %v793_v7  ;;  %v654_v16 = vadd.f32 %v2338_v0, %v653_v10 }
 0x1e1   :  { %944 = vmatprep.mubr.f32.mxu0 %v1900_v63  ;;  %v797_v23 = vmax.f32 %v659_v19, 0.0 }
 0x1e2   :  { %v1684_v13 = vpop.f32.mrb[6].mxu1  ;;  %v796_v20 = vmax.f32 %v654_v16, 0.0 }
 0x1e3   :  { %v663_v14 = vpop.f32.mrb[7].mxu1  ;;  %v669_v27 = vadd.f32 %v1684_v13, %v2338_v0 }
 0x1e4   :  { %945 = vmatmul.mubr.f32.gmra.mrb[36].mxu0 %v794_v12  ;;  %v664_v24 = vadd.f32 %v2338_v0, %v663_v14 }
 0x1e5   :  { %950 = vmatprep.mubr.f32.mxu0 %v1900_v63  ;;  %v799_v32 = vmax.f32 %v669_v27, 0.0 }
 0x1e6   :  { %v1687_v17 = vpop.f32.mrb[8].mxu1  ;;  %v798_v30 = vmax.f32 %v664_v24, 0.0 }
 0x1e7   :  { %v673_v18 = vpop.f32.mrb[9].mxu1  ;;  %v679_v38 = vadd.f32 %v1687_v17, %v2338_v0 }
 0x1e8   :  { %951 = vmatmul.mubr.f32.gmra.mrb[38].mxu0 %v795_v15  ;;  %v674_v33 = vadd.f32 %v2338_v0, %v673_v18 }
 0x1e9   :  { %956 = vmatprep.mubr.f32.mxu0 %v1900_v63  ;;  %v801_v45 = vmax.f32 %v679_v38, 0.0  ;;  %v1294_v38 = vld [vmem:[#allocation6 + $0x8] sm:$0xff] }
 0x1ea   :  { %v1690_v21 = vpop.f32.mrb[10].mxu1  ;;  %v800_v39 = vmax.f32 %v674_v33, 0.0 }
 0x1eb   :  { %v683_v22 = vpop.f32.mrb[11].mxu1  ;;  %v689_v51 = vadd.f32 %v1690_v21, %v2338_v0 }
 0x1ec   :  { %957 = vmatmul.mubr.f32.gmra.mrb[40].mxu0 %v796_v20  ;;  %v684_v46 = vadd.f32 %v2338_v0, %v683_v22 }
 0x1ed   :  { %962 = vmatprep.mubr.f32.mxu0 %v1900_v63  ;;  %v803_v58 = vmax.f32 %v689_v51, 0.0  ;;  %v1315_v51 = vld [vmem:[#allocation6 + $0xb0] sm:$0xff] }
 0x1ee   :  { %v1693_v25 = vpop.f32.mrb[12].mxu1  ;;  %v802_v52 = vmax.f32 %v684_v46, 0.0  ;;  %v1313_v46 = vld [vmem:[#allocation6 + $0xa0] sm:$0xff] }
 0x1ef   :  { %v693_v26 = vpop.f32.mrb[13].mxu1  ;;  %v699_v29 = vadd.f32 %v1693_v25, %v2338_v0 }
 0x1f0   :  { %963 = vmatmul.mubr.f32.gmra.mrb[42].mxu0 %v797_v23  ;;  %v694_v59 = vadd.f32 %v2338_v0, %v693_v26 }
 0x1f1   :  { %968 = vmatprep.mubr.f32.mxu0 %v1900_v63  ;;  %v805_v9 = vmax.f32 %v699_v29, 0.0 }
 0x1f2   :  { %v2354_v31 = vpop.f32.mrb[14].mxu1  ;;  %v804_v2 = vmax.f32 %v694_v59, 0.0  ;;  %v1318_v59 = vld [vmem:[#allocation6 + $0xc8] sm:$0xff] }
 0x1f3   :  { %v2356_v28 = vpop.f32.mrb[15].mxu1  ;;  %v709_v17 = vadd.f32 %v2354_v31, %v2338_v0 }
 0x1f4   :  { %969 = vmatmul.mubr.f32.gmra.mrb[44].mxu0 %v798_v30  ;;  %v704_v10 = vadd.f32 %v2338_v0, %v2356_v28 }
 0x1f5   :  { %974 = vmatprep.mubr.f32.mxu0 %v1900_v63  ;;  %v807_v24 = vmax.f32 %v709_v17, 0.0  ;;  %v1324_v17 = vld [vmem:[#allocation6 + $0xf8] sm:$0xff] }
 0x1f6   :  { %v1699_v34 = vpop.f32.mrb[16].mxu1  ;;  %v806_v18 = vmax.f32 %v704_v10, 0.0 }
 0x1f7   :  { %v2361_v35 = vadd.f32 %v1699_v34, %v2338_v0  ;;  %v713_v36 = vpop.f32.mrb[17].mxu1  ;;  %v1309_v34 = vld [vmem:[#allocation6 + $0x80] sm:$0xff] }
 0x1f8   :  { %975 = vmatmul.mubr.f32.gmra.mrb[46].mxu0 %v799_v32  ;;  %v2364_v37 = vadd.f32 %v2338_v0, %v713_v36  ;;  %v1293_v36 = vld [vmem:[#allocation6] sm:$0xff] }
 0x1f9   :  { %980 = vmatprep.mubr.f32.mxu0 %v1900_v63 }
 0x1fa   :  { %v1702_v40 = vpop.f32.mrb[18].mxu1  ;;  %v808_v26 = vmax.f32 %v2364_v37, 0.0 }
 0x1fb   :  { %v729_v41 = vadd.f32 %v1702_v40, %v2338_v0  ;;  %v723_v42 = vpop.f32.mrb[19].mxu1  ;;  %v1311_v40 = vld [vmem:[#allocation6 + $0x90] sm:$0xff] }
 0x1fc   :  { %981 = vmatmul.mubr.f32.gmra.mrb[48].mxu0 %v800_v39  ;;  %v2370_v43 = vadd.f32 %v2338_v0, %v723_v42  ;;  %v1771_v39 = vpack.c.bf16 %v1294_v38, %v1293_v36 }
 0x1fd   :  { %986 = vmatprep.mubr.f32.mxu0 %v1900_v63  ;;  %v811_v44 = vmax.f32 %v729_v41, 0.0  ;;  %v1312_v41 = vld [vmem:[#allocation6 + $0x98] sm:$0xff] }
 0x1fe   :  { %v1705_v47 = vpop.f32.mrb[20].mxu1  ;;  %v810_v31 = vmax.f32 %v2370_v43, 0.0  ;;  %v1773_v42 = vpack.c.bf16 %v1312_v41, %v1311_v40  ;;  %v1295_v43 = vld [vmem:[#allocation6 + $0x10] sm:$0xff] }
 0x1ff   :  { %v733_v48 = vpop.f32.mrb[21].mxu1  ;;  %1047 = vmatmul.mubr.f32.vlgmr.msra.gmra.mrb[32].mxu1 %v811_v44  ;;  %v739_v49 = vadd.f32 %v1705_v47, %v2338_v0  ;;  %v1296_v44 = vld [vmem:[#allocation6 + $0x18] sm:$0xff]  ;;  %v1314_v47 = vld [vmem:[#allocation6 + $0xa8] sm:$0xff] }
 0x200   :  { %987 = vmatmul.mubr.f32.gmra.mrb[50].mxu0 %v801_v45  ;;  %v734_v50 = vadd.f32 %v2338_v0, %v733_v48  ;;  %1052 = vmatprep.mubr.f32.mxu1 %v1900_v63  ;;  %v1775_v45 = vpack.c.bf16 %v1296_v44, %v1295_v43  ;;  %v1297_v48 = vld [vmem:[#allocation6 + $0x20] sm:$0xff] }
 0x201   :  { %992 = vmatprep.mubr.f32.mxu0 %v1900_v63  ;;  %v813_v56 = vmax.f32 %v739_v49, 0.0  ;;  %v1298_v49 = vld [vmem:[#allocation6 + $0x28] sm:$0xff] }
 0x202   :  { %v812_v53 = vmax.f32 %v734_v50, 0.0  ;;  %v1708_v54 = vpop.f32.mrb[22].mxu1  ;;  %v1779_v50 = vpack.c.bf16 %v1298_v49, %v1297_v48 }
 0x203   :  { %v743_v55 = vpop.f32.mrb[23].mxu1  ;;  %v749_v62 = vadd.f32 %v1708_v54, %v2338_v0  ;;  %v1299_v54 = vld [vmem:[#allocation6 + $0x30] sm:$0xff] }
 0x204   :  { %993 = vmatmul.mubr.f32.gmra.mrb[52].mxu0 %v802_v52  ;;  %1053 = vmatmul.mubr.f32.gmra.mrb[34].mxu1 %v812_v53  ;;  %v744_v57 = vadd.f32 %v2338_v0, %v743_v55  ;;  %v1316_v52 = vld [vmem:[#allocation6 + $0xb8] sm:$0xff] }
 0x205   :  { %998 = vmatprep.mubr.f32.mxu0 %v1900_v63  ;;  %1058 = vmatprep.mubr.f32.mxu1 %v1900_v63  ;;  %v815_v6 = vmax.f32 %v749_v62, 0.0  ;;  %v1781_v53 = vpack.c.bf16 %v1316_v52, %v1315_v51  ;;  %v1300_v55 = vld [vmem:[#allocation6 + $0x38] sm:$0xff]  ;;  %v1302_v62 = vld [vmem:[#allocation6 + $0x48] sm:$0xff] }
 0x206   :  { %v1711_v60 = vpop.f32.mrb[24].mxu1  ;;  %v814_v1 = vmax.f32 %v744_v57, 0.0  ;;  %v858_v57 = vlaneseq }
 0x207   :  { %v753_v61 = vpop.f32.mrb[25].mxu1  ;;  %v759_v14 = vadd.f32 %v1711_v60, %v2338_v0 }
 0x208   :  { %999 = vmatmul.mubr.f32.gmra.mrb[54].mxu0 %v803_v58  ;;  %1059 = vmatmul.mubr.f32.gmra.mrb[36].mxu1 %v813_v56  ;;  %v754_v7 = vadd.f32 %v2338_v0, %v753_v61  ;;  %v1783_v56 = vpack.c.bf16 %v1300_v55, %v1299_v54  ;;  %v1317_v58 = vld [vmem:[#allocation6 + $0xc0] sm:$0xff]  ;;  %v2417_v29 = vshrl.u32 %v858_v57, 7 }
 0x209   :  { %1004 = vmatprep.mubr.f32.mxu0 %v1900_v63  ;;  %1064 = vmatprep.mubr.f32.mxu1 %v1900_v63  ;;  %v817_v22 = vmax.f32 %v759_v14, 0.0  ;;  %v1785_v60 = vpack.c.bf16 %v1318_v59, %v1317_v58  ;;  %v1301_v61 = vld [vmem:[#allocation6 + $0x40] sm:$0xff] }
 0x20a   :  { %v1714_v3 = vpop.f32.mrb[26].mxu1  ;;  %v816_v15 = vmax.f32 %v754_v7, 0.0  ;;  %v864_v10 = vsub.s32 1, %v2417_v29 }
 0x20b   :  { %v769_v4 = vadd.f32 %v1714_v3, %v2338_v0  ;;  %v763_v5 = vpop.f32.mrb[27].mxu1  ;;  %v1320_v3 = vld [vmem:[#allocation6 + $0xd8] sm:$0xff] }
 0x20c   :  { %1005 = vmatmul.mubr.f32.gmra.mrb[56].mxu0 %v804_v2  ;;  %1065 = vmatmul.mubr.f32.gmra.mrb[38].mxu1 %v814_v1  ;;  %v764_v8 = vadd.f32 %v2338_v0, %v763_v5  ;;  %v1787_v1 = vpack.c.bf16 %v1302_v62, %v1301_v61  ;;  %v1319_v2 = vld [vmem:[#allocation6 + $0xd0] sm:$0xff] }
 0x20d   :  { %1010 = vmatprep.mubr.f32.mxu0 %v1900_v63  ;;  %1070 = vmatprep.mubr.f32.mxu1 %v1900_v63  ;;  %v819_v27 = vmax.f32 %v769_v4, 0.0  ;;  %v1789_v4 = vpack.c.bf16 %v1320_v3, %v1319_v2  ;;  %v1303_v5 = vld [vmem:[#allocation6 + $0x50] sm:$0xff] }
 0x20e   :  { %v1717_v11 = vpop.f32.mrb[28].mxu1  ;;  %v818_v25 = vmax.f32 %v764_v8, 0.0  ;;  %v856_v8 = vld [vmem:[%s2574_s6] sm:$0x3] }
 0x20f   :  { %v779_v12 = vadd.f32 %v1717_v11, %v2338_v0  ;;  %v773_v13 = vpop.f32.mrb[29].mxu1  ;;  %v1321_v11 = vld [vmem:[#allocation6 + $0xe0] sm:$0xff] }
 0x210   :  { %1011 = vmatmul.mubr.f32.gmra.mrb[58].mxu0 %v805_v9  ;;  %1071 = vmatmul.mubr.f32.gmra.mrb[40].mxu1 %v815_v6  ;;  %v774_v16 = vadd.f32 %v2338_v0, %v773_v13  ;;  %v1304_v6 = vld [vmem:[#allocation6 + $0x58] sm:$0xff]  ;;  %v860_v9 = vsub.s32 0, %v2417_v29  ;;  %v1305_v13 = vld [vmem:[#allocation6 + $0x60] sm:$0xff] }
 0x211   :  { %1016 = vmatprep.mubr.f32.mxu0 %v1900_v63  ;;  %1076 = vmatprep.mubr.f32.mxu1 %v1900_v63  ;;  %v821_v28 = vmax.f32 %v779_v12, 0.0  ;;  %v1791_v7 = vpack.c.bf16 %v1304_v6, %v1303_v5  ;;  %v1322_v12 = vld [vmem:[#allocation6 + $0xe8] sm:$0xff] }
 0x212   :  { %v1720_v19 = vpop.f32.mrb[30].mxu1  ;;  %v820_v30 = vmax.f32 %v774_v16, 0.0  ;;  %v1793_v14 = vpack.c.bf16 %v1322_v12, %v1321_v11  ;;  %v1323_v16 = vld [vmem:[#allocation6 + $0xf0] sm:$0xff] }
 0x213   :  { %v789_v20 = vadd.f32 %v1720_v19, %v2338_v0  ;;  %v783_v21 = vpop.f32.mrb[31].mxu1 }
 0x214   :  { %1017 = vmatmul.mubr.f32.gmra.mrb[60].mxu0 %v806_v18  ;;  %1077 = vmatmul.mubr.f32.gmra.mrb[42].mxu1 %v816_v15  ;;  %v784_v23 = vadd.f32 %v2338_v0, %v783_v21  ;;  %v809_v0 = vmax.f32 %v2361_v35, 0.0  ;;  %v1310_v35 = vld [vmem:[#allocation6 + $0x88] sm:$0xff]  ;;  %v1307_v21 = vld [vmem:[#allocation6 + $0x70] sm:$0xff] }
 0x215   :  { %1022 = vmatprep.mubr.f32.mxu0 %v1900_v63  ;;  %1082 = vmatprep.mubr.f32.mxu1 %v1900_v63  ;;  %v823_v33 = vmax.f32 %v789_v20, 0.0  ;;  %v1769_v37 = vpack.c.bf16 %v1310_v35, %v1309_v34  ;;  %v1306_v15 = vld [vmem:[#allocation6 + $0x68] sm:$0xff]  ;;  %v1797_v20 = vpack.c.bf16 %v1324_v17, %v1323_v16 }
 0x216   :  { %v822_v32 = vmax.f32 %v784_v23, 0.0  ;;  %v1795_v19 = vpack.c.bf16 %v1306_v15, %v1305_v13  ;;  %v2424_v23 = vrot.slane %v856_v8, %v860_v9 }
 0x217   :  { %1770 = vmatprep.subr.bf16.mxu1 %v1769_v37 }
 0x218   :  { %1023 = vmatmul.mubr.f32.gmra.mrb[62].mxu0 %v807_v24  ;;  %1083 = vmatmul.mubr.f32.gmra.mrb[44].mxu1 %v817_v22  ;;  %v1308_v22 = vld [vmem:[#allocation6 + $0x78] sm:$0xff] }
 0x219   :  { %1028 = vmatprep.mubr.f32.mxu0 %v1900_v63  ;;  %1088 = vmatprep.mubr.f32.mxu1 %v1900_v63 }
 0x21a   :  { %1772 = vmatpush3.bf16.msra.mxu1 %v1771_v39 }
 0x21b   :  { %1774 = vmatprep.subr.bf16.mxu1 %v1773_v42 }
 0x21c   :  { %1029 = vmatmul.mubr.f32.gmra.mrb[64].mxu0 %v808_v26  ;;  %1089 = vmatmul.mubr.f32.gmra.mrb[46].mxu1 %v818_v25  ;;  %v2426_v25 = vrot.slane %v856_v8, %v864_v10  ;;  %v1799_v26 = vpack.c.bf16 %v1308_v22, %v1307_v21 }
 0x21d   :  { %1034 = vmatprep.mubr.f32.mxu0 %v1900_v63  ;;  %1094 = vmatprep.mubr.f32.mxu1 %v1900_v63 }
 0x21e   :  { %1776 = vmatpush3.bf16.msra.mxu1 %v1775_v45 }
 0x220   :  { %1035 = vmatmul.mubr.f32.gmra.mrb[66].mxu0 %v809_v0  ;;  %1095 = vmatmul.mubr.f32.gmra.mrb[48].mxu1 %v819_v27 }
 0x221   :  { %1040 = vmatprep.mubr.f32.mxu0 %v1900_v63  ;;  %1100 = vmatprep.mubr.f32.mxu1 %v1900_v63 }
 0x224   :  { %1041 = vmatmul.mubr.f32.gmra.mrb[68].mxu0 %v810_v31  ;;  %1101 = vmatmul.mubr.f32.gmra.mrb[50].mxu1 %v820_v30 }
 0x225   :  { %1106 = vmatprep.mubr.f32.mxu1 %v1900_v63 }
 0x228   :  { %1107 = vmatmul.mubr.f32.gmra.mrb[52].mxu1 %v821_v28 }
 0x229   :  { %1112 = vmatprep.mubr.f32.mxu1 %v1900_v63 }
 0x22c   :  { %1113 = vmatmul.mubr.f32.gmra.mrb[54].mxu1 %v822_v32 }
 0x22d   :  { %1118 = vmatprep.mubr.f32.mxu1 %v1900_v63  ;;  %v1777_v63 = vpack.c.bf16 %v1314_v47, %v1313_v46 }
 0x22f   :  { %1778 = vmatprep.subr.bf16.mxu1 %v1777_v63 }
 0x230   :  { %1119 = vmatmul.mubr.f32.gmra.mrb[56].mxu1 %v823_v33 }
 0x231   :  { %1780 = vmatpush3.bf16.msra.mxu1 %v1779_v50 }
 0x232   :  { %1782 = vmatprep.subr.bf16.mxu1 %v1781_v53 }
 0x235   :  { %1784 = vmatpush3.bf16.msra.mxu1 %v1783_v56 }
 0x236   :  { %1786 = vmatprep.subr.bf16.mxu1 %v1785_v60 }
 0x239   :  { %1788 = vmatpush3.bf16.msra.mxu1 %v1787_v1 }
 0x23a   :  { %1790 = vmatprep.subr.bf16.mxu1 %v1789_v4 }
 0x23d   :  { %1792 = vmatpush3.bf16.msra.mxu1 %v1791_v7 }
 0x23e   :  { %1794 = vmatprep.subr.bf16.mxu1 %v1793_v14 }
 0x241   :  { %1796 = vmatpush3.bf16.msra.mxu1 %v1795_v19 }
 0x242   :  { %1798 = vmatprep.subr.bf16.mxu1 %v1797_v20 }
 0x245   :  { %1800 = vmatpush3.bf16.msra.mxu1 %v1799_v26 }
 0x2af   :  { %v934_v18 = vpop.f32.mrb[32].mxu0 }
 0x2b0   :  { %v936_v24 = vpop.f32.mrb[33].mxu0  ;;  %v935_v0 = vadd.f32 %v934_v18, %v2424_v23 }
 0x2b1   :  { %v937_v28 = vadd.f32 %v936_v24, %v2426_v25 }
 0x2b3   :  { %v940_v27 = vpop.f32.mrb[34].mxu0 }
 0x2b4   :  { %v941_v30 = vadd.f32 %v940_v27, %v2424_v23  ;;  %v942_v31 = vpop.f32.mrb[35].mxu0 }
 0x2b5   :  { %v943_v32 = vadd.f32 %v942_v31, %v2426_v25 }
 0x2b6   :  { %v1125_v33 = vmax.f32 %v935_v0, %v941_v30 }
 0x2b7   :  { %v1146_v34 = vmax.f32 %v937_v28, %v943_v32  ;;  %v946_v35 = vpop.f32.mrb[36].mxu0 }
 0x2b8   :  { %v947_v36 = vadd.f32 %v946_v35, %v2424_v23  ;;  %v948_v37 = vpop.f32.mrb[37].mxu0 }
 0x2b9   :  { %v949_v38 = vadd.f32 %v948_v37, %v2426_v25 }
 0x2ba   :  { %v1126_v39 = vmax.f32 %v1125_v33, %v947_v36 }
 0x2bb   :  { %v1147_v40 = vmax.f32 %v1146_v34, %v949_v38  ;;  %v952_v41 = vpop.f32.mrb[38].mxu0 }
 0x2bc   :  { %v953_v42 = vadd.f32 %v952_v41, %v2424_v23  ;;  %v954_v43 = vpop.f32.mrb[39].mxu0 }
 0x2bd   :  { %v955_v44 = vadd.f32 %v954_v43, %v2426_v25 }
 0x2be   :  { %v1127_v45 = vmax.f32 %v1126_v39, %v953_v42 }
 0x2bf   :  { %v1148_v46 = vmax.f32 %v1147_v40, %v955_v44  ;;  %v958_v47 = vpop.f32.mrb[40].mxu0 }
 0x2c0   :  { %v959_v63 = vadd.f32 %v958_v47, %v2424_v23  ;;  %v960_v48 = vpop.f32.mrb[41].mxu0 }
 0x2c1   :  { %v961_v49 = vadd.f32 %v960_v48, %v2426_v25 }
 0x2c2   :  { %v1128_v50 = vmax.f32 %v1127_v45, %v959_v63 }
 0x2c3   :  { %v1149_v51 = vmax.f32 %v1148_v46, %v961_v49  ;;  %v964_v52 = vpop.f32.mrb[42].mxu0 }
 0x2c4   :  { %v965_v53 = vadd.f32 %v964_v52, %v2424_v23  ;;  %v966_v54 = vpop.f32.mrb[43].mxu0 }
 0x2c5   :  { %v967_v55 = vadd.f32 %v966_v54, %v2426_v25 }
 0x2c6   :  { %v1129_v56 = vmax.f32 %v1128_v50, %v965_v53 }
 0x2c7   :  { %v1150_v57 = vmax.f32 %v1149_v51, %v967_v55  ;;  %v970_v58 = vpop.f32.mrb[44].mxu0 }
 0x2c8   :  { %v971_v59 = vadd.f32 %v970_v58, %v2424_v23  ;;  %v972_v60 = vpop.f32.mrb[45].mxu0 }
 0x2c9   :  { %v973_v61 = vadd.f32 %v972_v60, %v2426_v25 }
 0x2ca   :  { %v1130_v62 = vmax.f32 %v1129_v56, %v971_v59 }
 0x2cb   :  { %v1151_v1 = vmax.f32 %v1150_v57, %v973_v61  ;;  %v976_v2 = vpop.f32.mrb[46].mxu0 }
 0x2cc   :  { %v977_v3 = vadd.f32 %v976_v2, %v2424_v23  ;;  %v978_v4 = vpop.f32.mrb[47].mxu0 }
 0x2cd   :  { %v979_v5 = vadd.f32 %v978_v4, %v2426_v25 }
 0x2ce   :  { %v1131_v6 = vmax.f32 %v1130_v62, %v977_v3 }
 0x2cf   :  { %v1152_v7 = vmax.f32 %v1151_v1, %v979_v5  ;;  %v982_v8 = vpop.f32.mrb[48].mxu0 }
 0x2d0   :  { %v983_v9 = vadd.f32 %v982_v8, %v2424_v23  ;;  %v984_v10 = vpop.f32.mrb[49].mxu0 }
 0x2d1   :  { %v985_v11 = vadd.f32 %v984_v10, %v2426_v25 }
 0x2d2   :  { %v1132_v12 = vmax.f32 %v1131_v6, %v983_v9  ;;  %v2446_v13 = vpop.f32.mrb[32].mxu1 }
 0x2d3   :  { %v1153_v14 = vmax.f32 %v1152_v7, %v985_v11  ;;  %v988_v15 = vpop.f32.mrb[50].mxu0  ;;  %v2448_v16 = vpop.f32.mrb[33].mxu1 }
 0x2d4   :  { %v989_v17 = vadd.f32 %v988_v15, %v2424_v23  ;;  %v990_v18 = vpop.f32.mrb[51].mxu0 }
 0x2d5   :  { %v991_v19 = vadd.f32 %v990_v18, %v2426_v25 }
 0x2d6   :  { %v1133_v20 = vmax.f32 %v1132_v12, %v989_v17 }
 0x2d7   :  { %v1154_v21 = vmax.f32 %v1153_v14, %v991_v19  ;;  %v994_v22 = vpop.f32.mrb[52].mxu0  ;;  %v2452_v24 = vpop.f32.mrb[34].mxu1 }
 0x2d8   :  { %v995_v26 = vadd.f32 %v994_v22, %v2424_v23  ;;  %v996_v27 = vpop.f32.mrb[53].mxu0  ;;  %v2455_v0 = vpop.f32.mrb[35].mxu1 }
 0x2d9   :  { %v997_v30 = vadd.f32 %v996_v27, %v2426_v25 }
 0x2da   :  { %v1134_v31 = vmax.f32 %v1133_v20, %v995_v26 }
 0x2db   :  { %v1155_v28 = vmax.f32 %v1154_v21, %v997_v30  ;;  %v1000_v32 = vpop.f32.mrb[54].mxu0  ;;  %v2458_v33 = vpop.f32.mrb[36].mxu1 }
 0x2dc   :  { %v1001_v34 = vadd.f32 %v1000_v32, %v2424_v23  ;;  %v1002_v35 = vpop.f32.mrb[55].mxu0  ;;  %v2461_v36 = vpop.f32.mrb[37].mxu1 }
 0x2dd   :  { %v1003_v37 = vadd.f32 %v1002_v35, %v2426_v25 }
 0x2de   :  { %v1135_v38 = vmax.f32 %v1134_v31, %v1001_v34 }
 0x2df   :  { %v1156_v39 = vmax.f32 %v1155_v28, %v1003_v37  ;;  %v1006_v40 = vpop.f32.mrb[56].mxu0  ;;  %v2464_v41 = vpop.f32.mrb[38].mxu1 }
 0x2e0   :  { %v1007_v42 = vadd.f32 %v1006_v40, %v2424_v23  ;;  %v1008_v43 = vpop.f32.mrb[57].mxu0  ;;  %v2467_v44 = vpop.f32.mrb[39].mxu1 }
 0x2e1   :  { %v1009_v45 = vadd.f32 %v1008_v43, %v2426_v25 }
 0x2e2   :  { %v1136_v46 = vmax.f32 %v1135_v38, %v1007_v42 }
 0x2e3   :  { %v1157_v47 = vmax.f32 %v1156_v39, %v1009_v45  ;;  %v1012_v63 = vpop.f32.mrb[58].mxu0  ;;  %v2470_v48 = vpop.f32.mrb[40].mxu1 }
 0x2e4   :  { %v1013_v49 = vadd.f32 %v1012_v63, %v2424_v23  ;;  %v1014_v50 = vpop.f32.mrb[59].mxu0  ;;  %v2473_v51 = vpop.f32.mrb[41].mxu1 }
 0x2e5   :  { %v1015_v52 = vadd.f32 %v1014_v50, %v2426_v25 }
 0x2e6   :  { %v1137_v53 = vmax.f32 %v1136_v46, %v1013_v49  ;;  %v1049_v49 = vadd.f32 %v2446_v13, %v2424_v23 }
 0x2e7   :  { %v1158_v54 = vmax.f32 %v1157_v47, %v1015_v52  ;;  %v1018_v55 = vpop.f32.mrb[60].mxu0  ;;  %v2476_v56 = vpop.f32.mrb[42].mxu1 }
 0x2e8   :  { %v1019_v57 = vadd.f32 %v1018_v55, %v2424_v23  ;;  %v1020_v58 = vpop.f32.mrb[61].mxu0  ;;  %v2479_v59 = vpop.f32.mrb[43].mxu1 }
 0x2e9   :  { %v1021_v60 = vadd.f32 %v1020_v58, %v2426_v25  ;;  %v1055_v58 = vadd.f32 %v2452_v24, %v2424_v23  ;;  %v1067_v24 = vadd.f32 %v2464_v41, %v2424_v23 }
 0x2ea   :  { %v1138_v61 = vmax.f32 %v1137_v53, %v1019_v57  ;;  %v1051_v53 = vadd.f32 %v2448_v16, %v2426_v25 }
 0x2eb   :  { %v1159_v62 = vmax.f32 %v1158_v54, %v1021_v60  ;;  %v1024_v1 = vpop.f32.mrb[62].mxu0  ;;  %v2482_v2 = vpop.f32.mrb[44].mxu1 }
 0x2ec   :  { %v1025_v3 = vadd.f32 %v1024_v1, %v2424_v23  ;;  %v1026_v4 = vpop.f32.mrb[63].mxu0  ;;  %v2485_v5 = vpop.f32.mrb[45].mxu1 }
 0x2ed   :  { %v1027_v6 = vadd.f32 %v1026_v4, %v2426_v25  ;;  %v1063_v4 = vadd.f32 %v2461_v36, %v2426_v25 }
 0x2ee   :  { %v1139_v7 = vmax.f32 %v1138_v61, %v1025_v3  ;;  %v1061_v3 = vadd.f32 %v2458_v33, %v2424_v23  ;;  %v1075_v33 = vadd.f32 %v2473_v51, %v2426_v25 }
 0x2ef   :  { %v1160_v8 = vmax.f32 %v1159_v62, %v1027_v6  ;;  %v1030_v9 = vpop.f32.mrb[64].mxu0  ;;  %v2488_v10 = vpop.f32.mrb[46].mxu1  ;;  %v1057_v62 = vadd.f32 %v2455_v0, %v2426_v25  ;;  %v1069_v0 = vadd.f32 %v2467_v44, %v2426_v25  ;;  %v1085_v44 = vadd.f32 %v2482_v2, %v2424_v23 }
 0x2f0   :  { %v1140_v11 = vrot.slane %v1139_v7, 4  ;;  %v1032_v12 = vpop.f32.mrb[65].mxu0  ;;  %v2490_v14 = vpop.f32.mrb[47].mxu1  ;;  %v1031_v22 = vadd.f32 %v1030_v9, %v2424_v23  ;;  %v1091_v51 = vadd.f32 %v2488_v10, %v2424_v23 }
 0x2f1   :  { %v1161_v15 = vrot.slane %v1160_v8, 4  ;;  %v1033_v28 = vadd.f32 %v1032_v12, %v2426_v25  ;;  %v1073_v12 = vadd.f32 %v2470_v48, %v2424_v23  ;;  %v1087_v48 = vadd.f32 %v2485_v5, %v2426_v25 }
 0x2f2   :  { %v1141_v17 = vmax.f32 %v1139_v7, %v1140_v11 }
 0x2f3   :  { %v1162_v18 = vmax.f32 %v1160_v8, %v1161_v15  ;;  %v1036_v19 = vpop.f32.mrb[66].mxu0  ;;  %v2492_v20 = vpop.f32.mrb[48].mxu1 }
 0x2f4   :  { %v1142_v21 = vrot.slane %v1141_v17, 2  ;;  %v1037_v26 = vadd.f32 %v1036_v19, %v2424_v23  ;;  %v1038_v27 = vpop.f32.mrb[67].mxu0  ;;  %v1098_v30 = vpop.f32.mrb[49].mxu1 }
 0x2f5   :  { %v1163_v31 = vrot.slane %v1162_v18, 2  ;;  %v1039_v32 = vadd.f32 %v1038_v27, %v2426_v25  ;;  %v1099_v2 = vadd.f32 %v1098_v30, %v2426_v25 }
 0x2f6   :  { %v1143_v34 = vmax.f32 %v1141_v17, %v1142_v21  ;;  %v1167_v35 = vmax.f32 %v1031_v22, %v1037_v26  ;;  %v1081_v21 = vadd.f32 %v2479_v59, %v2426_v25  ;;  %v1097_v59 = vadd.f32 %v2492_v20, %v2424_v23 }
 0x2f7   :  { %v1164_v37 = vmax.f32 %v1162_v18, %v1163_v31  ;;  %v1188_v38 = vmax.f32 %v1033_v28, %v1039_v32  ;;  %v1042_v39 = vpop.f32.mrb[68].mxu0  ;;  %v1102_v40 = vpop.f32.mrb[50].mxu1  ;;  %v1079_v18 = vadd.f32 %v2476_v56, %v2424_v23  ;;  %v1093_v56 = vadd.f32 %v2490_v14, %v2426_v25 }
 0x2f8   :  { %v1144_v42 = vrot.slane %v1143_v34, 1  ;;  %v1043_v43 = vadd.f32 %v1042_v39, %v2424_v23  ;;  %v1044_v45 = vpop.f32.mrb[69].mxu0  ;;  %v1104_v46 = vpop.f32.mrb[51].mxu1 }
 0x2f9   :  { %v1165_v47 = vrot.slane %v1164_v37, 1  ;;  %v1045_v63 = vadd.f32 %v1044_v45, %v2426_v25 }
 0x2fa   :  { %v2502_v50 = vmax.f32 %v1143_v34, %v1144_v42  ;;  %v1168_v52 = vmax.f32 %v1167_v35, %v1043_v43 }
 0x2fb   :  { %v2506_v54 = vmax.f32 %v1164_v37, %v1165_v47  ;;  %v1189_v55 = vmax.f32 %v1188_v38, %v1045_v63  ;;  %v1108_v57 = vpop.f32.mrb[52].mxu1  ;;  %v1103_v37 = vadd.f32 %v1102_v40, %v2424_v23  ;;  %v1105_v38 = vadd.f32 %v1104_v46, %v2426_v25 }
 0x2fc   :  { %v1169_v60 = vmax.f32 %v1168_v52, %v1049_v49  ;;  %v1110_v61 = vpop.f32.mrb[53].mxu1  ;;  %v1109_v10 = vadd.f32 %v1108_v57, %v2424_v23 }
 0x2fd   :  { %v1217_v13 = vcombine.low %v2502_v50, %v2506_v54  ;;  %v1190_v1 = vmax.f32 %v1189_v55, %v1051_v53  ;;  %v1111_v14 = vadd.f32 %v1110_v61, %v2426_v25  ;;  %v1901_v61 = vmov 1983009808  }
 0x2fe   :  { %v1170_v16 = vmax.f32 %v1169_v60, %v1055_v58 }
 0x2ff   :  { %v1191_v6 = vmax.f32 %v1190_v1, %v1057_v62  ;;  %v1114_v7 = vpop.f32.mrb[54].mxu1  ;;  %v1219_v62 = vunpack.c.l.s4 %v1901_v61 }
 0x300   :  { %v1171_v8 = vmax.f32 %v1170_v16, %v1061_v3  ;;  %v1116_v9 = vpop.f32.mrb[55].mxu1  ;;  %v1115_v45 = vadd.f32 %v1114_v7, %v2424_v23 }
 0x301   :  { %v1192_v11 = vmax.f32 %v1191_v6, %v1063_v4  ;;  %v1117_v20 = vadd.f32 %v1116_v9, %v2426_v25  ;;  %v1220_v6 = vunpack.c.0.s8 %v1219_v62 }
 0x302   :  { %v1172_v15 = vmax.f32 %v1171_v8, %v1067_v24 }
 0x303   :  { %v1193_v17 = vmax.f32 %v1192_v11, %v1069_v0  ;;  %v1120_v36 = vpop.f32.mrb[56].mxu1  ;;  %v1223_v8 = vsub.s32 %v1220_v6, %v2417_v29 }
 0x304   :  { %v1173_v19 = vmax.f32 %v1172_v15, %v1073_v12  ;;  %v1122_v41 = vpop.f32.mrb[57].mxu1  ;;  %v1121_v30 = vadd.f32 %v1120_v36, %v2424_v23 }
 0x305   :  { %v1194_v22 = vmax.f32 %v1193_v17, %v1075_v33  ;;  %v1123_v40 = vadd.f32 %v1122_v41, %v2426_v25  ;;  %v1224_v0 = vrot.slane %v1217_v13, %v1223_v8 }
 0x306   :  { %v1174_v26 = vmax.f32 %v1173_v19, %v1079_v18  ;;  %v1497_v19 = vld [vmem:[%s2576_s8] ss:$0 sm:$0xff] }
 0x307   :  { %v1195_v27 = vmax.f32 %v1194_v22, %v1081_v21 }
 0x308   :  { %v1175_v31 = vmax.f32 %v1174_v26, %v1085_v44 }
 0x309   :  { %v1196_v28 = vmax.f32 %v1195_v27, %v1087_v48 }
 0x30a   :  { %v1176_v32 = vmax.f32 %v1175_v31, %v1091_v51 }
 0x30b   :  { %v1197_v34 = vmax.f32 %v1196_v28, %v1093_v56 }
 0x30c   :  { %v1177_v35 = vmax.f32 %v1176_v32, %v1097_v59 }
 0x30d   :  { %v1198_v5 = vmax.f32 %v1197_v34, %v1099_v2 }
 0x30e   :  { %v1178_v39 = vmax.f32 %v1177_v35, %v1103_v37 }
 0x30f   :  { %v1199_v42 = vmax.f32 %v1198_v5, %v1105_v38 }
 0x310   :  { %v1179_v43 = vmax.f32 %v1178_v39, %v1109_v10 }
 0x311   :  { %v1200_v47 = vmax.f32 %v1199_v42, %v1111_v14 }
 0x312   :  { %v1180_v63 = vmax.f32 %v1179_v43, %v1115_v45 }
 0x313   :  { %v1201_v49 = vmax.f32 %v1200_v47, %v1117_v20 }
 0x314   :  { %v1181_v52 = vmax.f32 %v1180_v63, %v1121_v30 }
 0x315   :  { %v1202_v46 = vmax.f32 %v1201_v49, %v1123_v40 }
 0x316   :  { %v1182_v53 = vrot.slane %v1181_v52, 4 }
 0x317   :  { %v1203_v55 = vrot.slane %v1202_v46, 4 }
 0x318   :  { %v1183_v57 = vmax.f32 %v1181_v52, %v1182_v53 }
 0x319   :  { %v1204_v58 = vmax.f32 %v1202_v46, %v1203_v55 }
 0x31a   :  { %v1184_v60 = vrot.slane %v1183_v57, 2 }
 0x31b   :  { %v1205_v1 = vrot.slane %v1204_v58, 2 }
 0x31c   :  { %v1185_v3 = vmax.f32 %v1183_v57, %v1184_v60 }
 0x31d   :  { %v1206_v16 = vmax.f32 %v1204_v58, %v1205_v1 }
 0x31e   :  { %v1186_v4 = vrot.slane %v1185_v3, 1 }
 0x31f   :  { %v1207_v7 = vrot.slane %v1206_v16, 1 }
 0x320   :  { %v1187_v24 = vmax.f32 %v1185_v3, %v1186_v4 }
 0x321   :  { %v1208_v23 = vmax.f32 %v1206_v16, %v1207_v7 }
 0x323   :  { %v1225_v25 = vcombine.low %v1187_v24, %v1208_v23 }
 0x325   :  { %v1232_v9 = vrot.slane %v1225_v25, %v1223_v8 }
 0x327   :  { %v1237_v11 = vrot.slane %v1232_v9, 7 }
 0x329   :  { %v1239_v12 = vsel %vm1238_vm2, %v1237_v11, %v1224_v0 }
 0x32a   :  { %v1241_v15 = vsel %vm1240_vm3, %v1237_v11, %v1239_v12 }
 0x32b   :  { %v1243_v33 = vsel %vm1242_vm4, %v1237_v11, %v1241_v15 }
 0x32c   :  { %v1245_v17 = vsel %vm1244_vm5, %v1237_v11, %v1243_v33 }
 0x32d   :  { %1247 = vst [vmem:[#allocation2] sm:$0xf] %v1245_v17 }
 0x334   :  { %v1498_v36 = vld.sshfl [vmem:[#allocation2] sm:$0x33 pattern:$0x76325410] }
 0x335   :  { %v1340_v18 = vcombine.high %v1498_v36, %v1498_v36 }
 0x337   :  { %1407 = vmatprep.mubr.f32.mxu1 %v1340_v18 }
 0x338   :  { %1408 = vmatmul.mubr.f32.vlgmr.msra.gmra.mrb[58].mxu1 %v1498_v36 }
 0x40b   :  { %v1604_v29 = vpop.f32.mrb[58].mxu1 }
 0x40c   :  { %v1605_v50 = vpop.f32.mrb[59].mxu1 }
 0x40d   :  { %v1606_v54 = vadd.f32 %v1605_v50, %v1604_v29 }
 0x40f   :  { %v1410_v13 = vadd.f32 %v1606_v54, %v1497_v19 }
 0x411   :  { %v1413_v41 = vmax.f32 %v1410_v13, 0.0 }
 0x413   :  { %1414 = vst [vmem:[#allocation8] sm:$0x3] %v1413_v41 }
 0x414   :  { %1879 = shalt.err (!%p1876_p6)
}
 0x415   :  { %s1880_s27 = scalar_lea.hbm %s2577_s9, 32 }
 0x416   :  { %p1881_p7 = scmp.ne.s32.totalorder %s2577_s9, %s1880_s27  ;;  %p1884_p8 = scmp.lt.u32.totalorder %s1880_s27, %s2577_s9 }
 0x418   :  { %p1886_p9 = pnand %p1884_p8, %p1881_p7 }
 0x41a   :  { %1889 = shalt.err (!%p1886_p9)
}
 0x41b   :  { %1424 = dma.vmem_to_hbm [thread:$0]  %s1422_s23, 32, %s2577_s9, [#allocation5]  }
 0x41c   :  { %1894 = dma.done.wait [#allocation5], 32  }
 0x41d   :  { %1895 = vsyncadd [#allocation5], 4294967264 }
 0x41e   :  { %1428 = vsyncpa [#allocation4], 1 }
 0x41f   :  { %1429 = vsyncpa [#allocation7], 1 }
 0x420   :  { %1430 = vsyncpa [#allocation5], 1 }

</bundles_post_ra>
